<compile_context>
chip_gen: v7x
topology: tpu7x:2x2x1
jax: 0.10.0
libtpu: 0.0.40
codegen_flags: <defaults>
</compile_context>

<pallas_src>
import functools

import jax
import jax.numpy as jnp
from jax import lax
from jax.experimental import pallas as pl
from jax.experimental.pallas import tpu as pltpu


def _round_up(x, m):
    return (x + m - 1) // m * m


def posterior_encoder_kernel(kernel_size, max_pad,
                             # scalar prefetch (SMEM)
                             lens_ref, dil_ref,
                             # inputs
                             x_ref, eps_ref,                       # (1, L, Cin), (1, L, H)
                             in_w_ref, in_b_ref,                   # (Cin, H), (1, H)
                             wn_t_w_ref, wn_t_b_ref,               # (1, K*H, H), (1, 1, H)
                             wn_s_w_ref, wn_s_b_ref,               # (1, K*H, H), (1, 1, H)
                             rs_r_w_ref, rs_r_b_ref,               # (1, H, H),   (1, 1, H)
                             rs_s_w_ref, rs_s_b_ref,               # (1, H, H),   (1, 1, H)
                             out_m_w_ref, out_m_b_ref,             # (H, H), (1, H)
                             out_l_w_ref, out_l_b_ref,             # (H, H), (1, H)
                             # outputs
                             mean_ref, logstd_ref, z_ref,          # (1, L, H) each
                             # scratch (persist across the layer grid axis)
                             h_scr, skip_scr, hpad_scr, mask_scr):
    b = pl.program_id(0)
    layer = pl.program_id(1)
    num_layers = pl.num_programs(1)
    L = x_ref.shape[1]
    H = h_scr.shape[1]
    K = kernel_size
    half = (K - 1) // 2

    # ---- layer 0: mask + in_proj (1x1 conv == channel matmul) + accumulator init ----
    @pl.when(layer == 0)
    def _():
        length = lens_ref[b]
        m = (lax.broadcasted_iota(jnp.int32, (L, 1), 0) < length).astype(jnp.float32)
        mask_scr[...] = m

        x = x_ref[0].astype(jnp.bfloat16)                               # (L, Cin)
        h0 = (jnp.dot(x, in_w_ref[...], preferred_element_type=jnp.float32)
              + in_b_ref[...]) * m                                       # (L, H)
        h_scr[...] = h0
        skip_scr[...] = jnp.zeros_like(skip_scr)
        if max_pad > 0:
            # zero only the halo rows; the body is rewritten every layer below.
            hpad_scr[pl.ds(0, max_pad), :] = jnp.zeros((max_pad, H), jnp.float32)
            hpad_scr[pl.ds(L + max_pad, max_pad), :] = jnp.zeros((max_pad, H), jnp.float32)

    mask = mask_scr[...]                                                 # (L, 1)

    # ---- dilated "same" conv for this layer from the zero-padded copy of h ----
    hpad_scr[pl.ds(max_pad, L), :] = h_scr[...]
    d = dil_ref[layer]
    taps = [hpad_scr[pl.ds(max_pad + (j - half) * d, L), :] for j in range(K)]
    tap_cat = (jnp.concatenate(taps, axis=-1) if K > 1 else taps[0]).astype(jnp.bfloat16)

    a_t = (jnp.dot(tap_cat, wn_t_w_ref[0], preferred_element_type=jnp.float32)
           + wn_t_b_ref[0])
    a_s = (jnp.dot(tap_cat, wn_s_w_ref[0], preferred_element_type=jnp.float32)
           + wn_s_b_ref[0])
    acts = (jnp.tanh(a_t) * jax.nn.sigmoid(a_s)).astype(jnp.bfloat16)    # (L, H)
    # TODO(synk): p_dropout omitted -- inference semantics (identity).

    skp = (jnp.dot(acts, rs_s_w_ref[0], preferred_element_type=jnp.float32)
           + rs_s_b_ref[0])
    skip_scr[...] = skip_scr[...] + skp

    @pl.when(layer < num_layers - 1)
    def _():
        res = (jnp.dot(acts, rs_r_w_ref[0], preferred_element_type=jnp.float32)
               + rs_r_b_ref[0])
        h_scr[...] = (h_scr[...] + res) * mask

    # ---- last layer: out_proj + reparameterization, H-wide lane tiles ----
    @pl.when(layer == num_layers - 1)
    def _():
        wn_out = (skip_scr[...] * mask).astype(jnp.bfloat16)
        mean = (jnp.dot(wn_out, out_m_w_ref[...], preferred_element_type=jnp.float32)
                + out_m_b_ref[...]) * mask
        logstd = (jnp.dot(wn_out, out_l_w_ref[...], preferred_element_type=jnp.float32)
                  + out_l_b_ref[...]) * mask
        z = (mean + jnp.exp(logstd) * eps_ref[0]) * mask
        mean_ref[0] = mean
        logstd_ref[0] = logstd
        z_ref[0] = z


def posterior_encoder(x, x_lengths, eps, params, *,
                      num_layers, kernel_size, dilation_rate, hidden):
    """x: (B, Cin, L) f32; x_lengths: (B,) int; eps: (B, H, L) f32 (randn)."""
    B, Cin, L = x.shape
    H = hidden
    K = kernel_size
    NL = num_layers

    x_blc = jnp.transpose(x, (0, 2, 1)).astype(jnp.float32)       # (B, L, Cin)
    eps_blc = jnp.transpose(eps, (0, 2, 1)).astype(jnp.float32)   # (B, L, H)

    # mask is trivially recomputable -> computed in the wrapper, not a kernel output.
    x_mask = (jnp.arange(L)[None, :] < x_lengths[:, None]).astype(jnp.float32)[:, None, :]

    lens = x_lengths.astype(jnp.int32)
    dilations = jnp.asarray([dilation_rate ** i for i in range(NL)], dtype=jnp.int32)
    max_pad = _round_up((K - 1) // 2 * dilation_rate ** (NL - 1), 8)

    # --- pre-split / reshape weights; matmul operands in bf16, biases in f32 ---
    bf = jnp.bfloat16
    f32 = jnp.float32
    in_w = params["in_w"].astype(bf)
    in_b = params["in_b"].astype(f32)
    w_in = params["wn_in_w"].reshape(NL, K * H, 2 * H)            # rows: j*H + c
    wn_t_w = w_in[:, :, :H].astype(bf)
    wn_s_w = w_in[:, :, H:].astype(bf)
    wn_t_b = params["wn_in_b"][:, :, :H].astype(f32)
    wn_s_b = params["wn_in_b"][:, :, H:].astype(f32)
    rs_r_w = params["wn_rs_w"][:, :, :H].astype(bf)
    rs_s_w = params["wn_rs_w"][:, :, H:].astype(bf)
    rs_r_b = params["wn_rs_b"][:, :, :H].astype(f32)
    rs_s_b = params["wn_rs_b"][:, :, H:].astype(f32)
    out_m_w = params["out_w"][:, :H].astype(bf)
    out_l_w = params["out_w"][:, H:].astype(bf)
    out_m_b = params["out_b"][:, :H].astype(f32)
    out_l_b = params["out_b"][:, H:].astype(f32)

    kern = functools.partial(posterior_encoder_kernel, K, max_pad)

    def const_spec(arr):
        nd = arr.ndim
        return pl.BlockSpec(arr.shape, lambda b, i, lens, dil, _nd=nd: (0,) * _nd)

    def batch_spec(shape):
        return pl.BlockSpec(shape, lambda b, i, lens, dil: (b, 0, 0))

    def layer_spec(shape):
        return pl.BlockSpec(shape, lambda b, i, lens, dil: (i, 0, 0))

    grid_spec = pltpu.PrefetchScalarGridSpec(
        num_scalar_prefetch=2,
        grid=(B, NL),
        in_specs=[
            batch_spec((1, L, Cin)),                   # x
            batch_spec((1, L, H)),                     # eps
            const_spec(in_w), const_spec(in_b),
            layer_spec((1, K * H, H)), layer_spec((1, 1, H)),   # WN in-conv (tanh half)
            layer_spec((1, K * H, H)), layer_spec((1, 1, H)),   # WN in-conv (sigmoid half)
            layer_spec((1, H, H)), layer_spec((1, 1, H)),       # res half
            layer_spec((1, H, H)), layer_spec((1, 1, H)),       # skip half
            const_spec(out_m_w), const_spec(out_m_b),
            const_spec(out_l_w), const_spec(out_l_b),
        ],
        out_specs=[
            batch_spec((1, L, H)),                     # mean
            batch_spec((1, L, H)),                     # log_std
            batch_spec((1, L, H)),                     # z
        ],
        scratch_shapes=[
            pltpu.VMEM((L, H), jnp.float32),                      # h
            pltpu.VMEM((L, H), jnp.float32),                      # skip accumulator
            pltpu.VMEM((L + 2 * max_pad, H), jnp.float32),        # zero-padded h
            pltpu.VMEM((L, 1), jnp.float32),                      # cached sequence mask
        ],
    )

    mean, logstd, z = pl.pallas_call(
        kern,
        grid_spec=grid_spec,
        out_shape=(
            jax.ShapeDtypeStruct((B, L, H), jnp.float32),
            jax.ShapeDtypeStruct((B, L, H), jnp.float32),
            jax.ShapeDtypeStruct((B, L, H), jnp.float32),
        ),
        compiler_params=pltpu.CompilerParams(
            dimension_semantics=("parallel", "arbitrary"),
            vmem_limit_bytes=48 * 1024 * 1024),
    )(lens, dilations, x_blc, eps_blc,
      in_w, in_b,
      wn_t_w, wn_t_b, wn_s_w, wn_s_b,
      rs_r_w, rs_r_b, rs_s_w, rs_s_b,
      out_m_w, out_m_b, out_l_w, out_l_b)

    to_bcl = lambda a: jnp.transpose(a, (0, 2, 1))   # back to PyTorch layout (B, C, L)
    return to_bcl(mean), to_bcl(logstd), to_bcl(z), x_mask


def init_params(key, *, in_channels, hidden, num_layers, kernel_size):
    """Deterministic synthetic weights (stored transposed for channels-last matmuls)."""
    H, Cin, NL, K = hidden, in_channels, num_layers, kernel_size
    ks = jax.random.split(key, 8)
    s = 0.1
    return {
        "in_w":    s * jax.random.normal(ks[0], (Cin, H), jnp.float32),
        "in_b":    s * jax.random.normal(ks[1], (1, H), jnp.float32),
        "wn_in_w": s * jax.random.normal(ks[2], (NL, K, H, 2 * H), jnp.float32),
        "wn_in_b": s * jax.random.normal(ks[3], (NL, 1, 2 * H), jnp.float32),
        # res/skip 1x1 convs; last layer only uses the skip half [:, H:2H]
        "wn_rs_w": s * jax.random.normal(ks[4], (NL, H, 2 * H), jnp.float32),
        "wn_rs_b": s * jax.random.normal(ks[5], (NL, 1, 2 * H), jnp.float32),
        "out_w":   s * jax.random.normal(ks[6], (H, 2 * H), jnp.float32),
        "out_b":   s * jax.random.normal(ks[7], (1, 2 * H), jnp.float32),
    }


def _reference(x, x_lengths, eps, params, *, num_layers, kernel_size, dilation_rate, hidden):
    """Pure-JAX f32 reference (channels-last math, PyTorch-layout I/O)."""
    B, Cin, L = x.shape
    H, K = hidden, kernel_size
    xb = jnp.transpose(x, (0, 2, 1)).astype(jnp.float32)
    epsb = jnp.transpose(eps, (0, 2, 1)).astype(jnp.float32)
    mask = (jnp.arange(L)[None, :, None] < x_lengths[:, None, None]).astype(jnp.float32)
    h = (xb @ params["in_w"] + params["in_b"]) * mask
    skip = jnp.zeros((B, L, H), jnp.float32)
    for i in range(num_layers):
        d = dilation_rate ** i
        pad = (K - 1) // 2 * d
        hp = jnp.pad(h, ((0, 0), (pad, pad), (0, 0)))
        a = jnp.zeros((B, L, 2 * H), jnp.float32) + params["wn_in_b"][i]
        for j in range(K):
            a = a + hp[:, j * d:j * d + L, :] @ params["wn_in_w"][i, j]
        acts = jnp.tanh(a[..., :H]) * jax.nn.sigmoid(a[..., H:])
        rs = acts @ params["wn_rs_w"][i] + params["wn_rs_b"][i]
        if i < num_layers - 1:
            h = (h + rs[..., :H]) * mask
        skip = skip + rs[..., H:]
    stats = ((skip * mask) @ params["out_w"] + params["out_b"]) * mask
    mean, logstd = stats[..., :H], stats[..., H:]
    z = (mean + jnp.exp(logstd) * epsb) * mask
    tb = lambda t: jnp.transpose(t, (0, 2, 1))
    return tb(mean), tb(logstd), tb(z)


if __name__ == "__main__":
    # Small shapes consistent with the module's forward: x (B, Cin, L), x_lengths (B,)
    B, Cin, L = 2, 4, 16
    H = 32
    NUM_LAYERS, KERNEL_SIZE, DILATION_RATE, P_DROPOUT = 2, 3, 2, 0.0

    root = jax.random.PRNGKey(0)
    k_x, k_eps, k_p = jax.random.split(root, 3)

    x = jax.random.uniform(k_x, (B, Cin, L), jnp.float32)
    x_lengths = jnp.array([10, 16], dtype=jnp.int32)
    eps = jax.random.normal(k_eps, (B, H, L), jnp.float32)   # randn_like(log_std), precomputed
    params = init_params(k_p, in_channels=Cin, hidden=H,
                         num_layers=NUM_LAYERS, kernel_size=KERNEL_SIZE)

    mean, log_std, z, x_mask = posterior_encoder(
        x, x_lengths, eps, params,
        num_layers=NUM_LAYERS, kernel_size=KERNEL_SIZE,
        dilation_rate=DILATION_RATE, hidden=H)

    jax.block_until_ready((mean, log_std, z, x_mask))

    assert mean.shape == (B, H, L) and log_std.shape == (B, H, L)
    assert z.shape == (B, H, L) and x_mask.shape == (B, 1, L)
    assert bool(jnp.all(jnp.isfinite(mean))) and bool(jnp.all(jnp.isfinite(z)))
    # masked positions must be zero
    assert bool(jnp.all(jnp.where(x_mask == 0, z, 0.0) == 0.0))

    # numerical check against a pure-JAX f32 reference (bf16 matmuls -> loose tol)
    r_mean, r_logstd, r_z = _reference(
        x, x_lengths, eps, params,
        num_layers=NUM_LAYERS, kernel_size=KERNEL_SIZE,
        dilation_rate=DILATION_RATE, hidden=H)
    for got, ref in ((mean, r_mean), (log_std, r_logstd), (z, r_z)):
        err = float(jnp.max(jnp.abs(got - ref)))
        assert err < 5e-2, f"mismatch vs reference: max abs err {err}"

    print("KERNEL_OK")
</pallas_src>

<mosaic_0001>
module attributes {stable_mosaic.version = 11 : i64} {
  func.func @posterior_encoder_kernel(%arg0: i32, %arg1: i32, %arg2: memref<2xi32, #tpu.memory_space<smem>>, %arg3: memref<2xi32, #tpu.memory_space<smem>>, %arg4: memref<1x16x4xf32, #tpu.memory_space<vmem>>, %arg5: memref<1x16x32xf32, #tpu.memory_space<vmem>>, %arg6: memref<4x32xbf16, #tpu.memory_space<vmem>>, %arg7: memref<1x32xf32, #tpu.memory_space<vmem>>, %arg8: memref<1x96x32xbf16, #tpu.memory_space<vmem>>, %arg9: memref<1x1x32xf32, #tpu.memory_space<vmem>>, %arg10: memref<1x96x32xbf16, #tpu.memory_space<vmem>>, %arg11: memref<1x1x32xf32, #tpu.memory_space<vmem>>, %arg12: memref<1x32x32xbf16, #tpu.memory_space<vmem>>, %arg13: memref<1x1x32xf32, #tpu.memory_space<vmem>>, %arg14: memref<1x32x32xbf16, #tpu.memory_space<vmem>>, %arg15: memref<1x1x32xf32, #tpu.memory_space<vmem>>, %arg16: memref<32x32xbf16, #tpu.memory_space<vmem>>, %arg17: memref<1x32xf32, #tpu.memory_space<vmem>>, %arg18: memref<32x32xbf16, #tpu.memory_space<vmem>>, %arg19: memref<1x32xf32, #tpu.memory_space<vmem>>, %arg20: memref<1x16x32xf32, #tpu.memory_space<vmem>>, %arg21: memref<1x16x32xf32, #tpu.memory_space<vmem>>, %arg22: memref<1x16x32xf32, #tpu.memory_space<vmem>>, %arg23: memref<16x32xf32, #tpu.memory_space<vmem>>, %arg24: memref<16x32xf32, #tpu.memory_space<vmem>>, %arg25: memref<32x32xf32, #tpu.memory_space<vmem>>, %arg26: memref<16x1xf32, #tpu.memory_space<vmem>>) attributes {dimension_semantics = [#tpu.dimension_semantics<parallel>, #tpu.dimension_semantics<arbitrary>], iteration_bounds = array<i64: 2, 2>, scalar_prefetch = 2 : i64, scratch_operands = 4 : i64, tpu.core_type = #tpu.core_type<tc>, window_params = [{transform_indices = @transform_0, window_bounds = array<i64: 1, 16, 4>}, {transform_indices = @transform_1, window_bounds = array<i64: 1, 16, 32>}, {pipeline_mode = #tpu.pipeline_mode<synchronous>, transform_indices = @transform_2, window_bounds = array<i64: 4, 32>}, {pipeline_mode = #tpu.pipeline_mode<synchronous>, transform_indices = @transform_3, window_bounds = array<i64: 1, 32>}, {transform_indices = @transform_4, window_bounds = array<i64: 1, 96, 32>}, {transform_indices = @transform_5, window_bounds = array<i64: 1, 1, 32>}, {transform_indices = @transform_6, window_bounds = array<i64: 1, 96, 32>}, {transform_indices = @transform_7, window_bounds = array<i64: 1, 1, 32>}, {transform_indices = @transform_8, window_bounds = array<i64: 1, 32, 32>}, {transform_indices = @transform_9, window_bounds = array<i64: 1, 1, 32>}, {transform_indices = @transform_10, window_bounds = array<i64: 1, 32, 32>}, {transform_indices = @transform_11, window_bounds = array<i64: 1, 1, 32>}, {pipeline_mode = #tpu.pipeline_mode<synchronous>, transform_indices = @transform_12, window_bounds = array<i64: 32, 32>}, {pipeline_mode = #tpu.pipeline_mode<synchronous>, transform_indices = @transform_13, window_bounds = array<i64: 1, 32>}, {pipeline_mode = #tpu.pipeline_mode<synchronous>, transform_indices = @transform_14, window_bounds = array<i64: 32, 32>}, {pipeline_mode = #tpu.pipeline_mode<synchronous>, transform_indices = @transform_15, window_bounds = array<i64: 1, 32>}, {transform_indices = @transform_16, window_bounds = array<i64: 1, 16, 32>}, {transform_indices = @transform_17, window_bounds = array<i64: 1, 16, 32>}, {transform_indices = @transform_18, window_bounds = array<i64: 1, 16, 32>}]} {
    %c0_i32 = arith.constant 0 : i32
    %0 = arith.cmpi eq, %arg1, %c0_i32 : i32
    %1 = arith.extui %0 : i1 to i32
    %c0_i32_0 = arith.constant 0 : i32
    %2 = arith.cmpi ne, %1, %c0_i32_0 : i32
    scf.if %2 {
      %60 = arith.index_cast %arg0 : i32 to index
      %61 = memref.load %arg2[%60] : memref<2xi32, #tpu.memory_space<smem>>
      %62 = tpu.iota {dimensions = array<i32: 0>} : vector<16x1xi32>
      %63 = vector.broadcast %61 : i32 to vector<16x1xi32>
      %64 = arith.cmpi slt, %62, %63 : vector<16x1xi32>
      %65 = arith.extui %64 : vector<16x1xi1> to vector<16x1xi32>
      %66 = arith.sitofp %65 : vector<16x1xi32> to vector<16x1xf32>
      %c0_40 = arith.constant 0 : index
      %c0_41 = arith.constant 0 : index
      %67 = vector.load %arg26[%c0_40, %c0_41] : memref<16x1xf32, #tpu.memory_space<vmem>>, vector<16x1xf32>
      tpu.vector_store %arg26[%c0_40, %c0_41], %66 {strides = array<i32>} : memref<16x1xf32, #tpu.memory_space<vmem>>, vector<16x1xf32>,
      %c0_42 = arith.constant 0 : index
      %c0_43 = arith.constant 0 : index
      %c0_44 = arith.constant 0 : index
      %68 = vector.load %arg4[%c0_42, %c0_43, %c0_44] : memref<1x16x4xf32, #tpu.memory_space<vmem>>, vector<1x16x4xf32>
      %69 = vector.shape_cast %68 : vector<1x16x4xf32> to vector<16x4xf32>
      %70 = arith.truncf %69 : vector<16x4xf32> to vector<16x4xbf16>
      %c0_45 = arith.constant 0 : index
      %c0_46 = arith.constant 0 : index
      %71 = vector.load %arg6[%c0_45, %c0_46] : memref<4x32xbf16, #tpu.memory_space<vmem>>, vector<4x32xbf16>
      %cst_47 = arith.constant dense<0.000000e+00> : vector<16x32xf32>
      %72 = tpu.matmul %70, %71, %cst_47 {dimension_numbers = #tpu.dot_dimension_numbers<[1], [0], [0], [1], [0, 0, 1, 1], [], []>} : vector<16x4xbf16>, vector<4x32xbf16>, vector<16x32xf32> -> vector<16x32xf32>
      %c0_48 = arith.constant 0 : index
      %c0_49 = arith.constant 0 : index
      %73 = vector.load %arg7[%c0_48, %c0_49] : memref<1x32xf32, #tpu.memory_space<vmem>>, vector<1x32xf32>
      %74 = vector.broadcast %73 : vector<1x32xf32> to vector<16x32xf32>
      %75 = arith.addf %72, %74 : vector<16x32xf32>
      %76 = vector.broadcast %66 : vector<16x1xf32> to vector<16x32xf32>
      %77 = arith.mulf %75, %76 : vector<16x32xf32>
      %c0_50 = arith.constant 0 : index
      %c0_51 = arith.constant 0 : index
      %78 = vector.load %arg23[%c0_50, %c0_51] : memref<16x32xf32, #tpu.memory_space<vmem>>, vector<16x32xf32>
      tpu.vector_store %arg23[%c0_50, %c0_51], %77 {strides = array<i32>} : memref<16x32xf32, #tpu.memory_space<vmem>>, vector<16x32xf32>,
      %cst_52 = arith.constant 0.000000e+00 : f32
      %79 = vector.broadcast %cst_52 : f32 to vector<16x32xf32>
      %c0_53 = arith.constant 0 : index
      %c0_54 = arith.constant 0 : index
      %80 = vector.load %arg24[%c0_53, %c0_54] : memref<16x32xf32, #tpu.memory_space<vmem>>, vector<16x32xf32>
      tpu.vector_store %arg24[%c0_53, %c0_54], %79 {strides = array<i32>} : memref<16x32xf32, #tpu.memory_space<vmem>>, vector<16x32xf32>,
      %cst_55 = arith.constant 0.000000e+00 : f32
      %81 = vector.broadcast %cst_55 : f32 to vector<8x32xf32>
      %c0_56 = arith.constant 0 : index
      %c0_57 = arith.constant 0 : index
      %82 = vector.load %arg25[%c0_56, %c0_57] : memref<32x32xf32, #tpu.memory_space<vmem>>, vector<8x32xf32>
      tpu.vector_store %arg25[%c0_56, %c0_57], %81 {strides = array<i32>} : memref<32x32xf32, #tpu.memory_space<vmem>>, vector<8x32xf32>,
      %cst_58 = arith.constant 0.000000e+00 : f32
      %83 = vector.broadcast %cst_58 : f32 to vector<8x32xf32>
      %c24 = arith.constant 24 : index
      %c0_59 = arith.constant 0 : index
      %84 = vector.load %arg25[%c24, %c0_59] : memref<32x32xf32, #tpu.memory_space<vmem>>, vector<8x32xf32>
      tpu.vector_store %arg25[%c24, %c0_59], %83 {strides = array<i32>} : memref<32x32xf32, #tpu.memory_space<vmem>>, vector<8x32xf32>,
    } else {
    }
    %c0 = arith.constant 0 : index
    %c0_1 = arith.constant 0 : index
    %3 = vector.load %arg26[%c0, %c0_1] : memref<16x1xf32, #tpu.memory_space<vmem>>, vector<16x1xf32>
    %c0_2 = arith.constant 0 : index
    %c0_3 = arith.constant 0 : index
    %4 = vector.load %arg23[%c0_2, %c0_3] : memref<16x32xf32, #tpu.memory_space<vmem>>, vector<16x32xf32>
    %c8 = arith.constant 8 : index
    %c0_4 = arith.constant 0 : index
    %5 = vector.load %arg25[%c8, %c0_4] : memref<32x32xf32, #tpu.memory_space<vmem>>, vector<16x32xf32>
    tpu.vector_store %arg25[%c8, %c0_4], %4 {strides = array<i32>} : memref<32x32xf32, #tpu.memory_space<vmem>>, vector<16x32xf32>,
    %6 = arith.index_cast %arg1 : i32 to index
    %7 = memref.load %arg3[%6] : memref<2xi32, #tpu.memory_space<smem>>
    %c-1_i32 = arith.constant -1 : i32
    %8 = arith.muli %c-1_i32, %7 : i32
    %c8_i32 = arith.constant 8 : i32
    %9 = arith.addi %c8_i32, %8 : i32
    %10 = arith.index_cast %9 : i32 to index
    %c0_5 = arith.constant 0 : index
    %11 = vector.load %arg25[%10, %c0_5] : memref<32x32xf32, #tpu.memory_space<vmem>>, vector<16x32xf32>
    %c0_i32_6 = arith.constant 0 : i32
    %12 = arith.muli %c0_i32_6, %7 : i32
    %c8_i32_7 = arith.constant 8 : i32
    %13 = arith.addi %c8_i32_7, %12 : i32
    %14 = arith.index_cast %13 : i32 to index
    %c0_8 = arith.constant 0 : index
    %15 = vector.load %arg25[%14, %c0_8] : memref<32x32xf32, #tpu.memory_space<vmem>>, vector<16x32xf32>
    %c1_i32 = arith.constant 1 : i32
    %16 = arith.muli %c1_i32, %7 : i32
    %c8_i32_9 = arith.constant 8 : i32
    %17 = arith.addi %c8_i32_9, %16 : i32
    %18 = arith.index_cast %17 : i32 to index
    %c0_10 = arith.constant 0 : index
    %19 = vector.load %arg25[%18, %c0_10] : memref<32x32xf32, #tpu.memory_space<vmem>>, vector<16x32xf32>
    %20 = tpu.concatenate %11, %15, %19 in 1 : vector<16x32xf32>, vector<16x32xf32>, vector<16x32xf32> -> vector<16x96xf32>
    %21 = arith.truncf %20 : vector<16x96xf32> to vector<16x96xbf16>
    %c0_11 = arith.constant 0 : index
    %c0_12 = arith.constant 0 : index
    %c0_13 = arith.constant 0 : index
    %22 = vector.load %arg8[%c0_11, %c0_12, %c0_13] : memref<1x96x32xbf16, #tpu.memory_space<vmem>>, vector<1x96x32xbf16>
    %23 = vector.shape_cast %22 : vector<1x96x32xbf16> to vector<96x32xbf16>
    %cst = arith.constant dense<0.000000e+00> : vector<16x32xf32>
    %24 = tpu.matmul %21, %23, %cst {dimension_numbers = #tpu.dot_dimension_numbers<[1], [0], [0], [1], [0, 0, 1, 1], [], []>} : vector<16x96xbf16>, vector<96x32xbf16>, vector<16x32xf32> -> vector<16x32xf32>
    %c0_14 = arith.constant 0 : index
    %c0_15 = arith.constant 0 : index
    %c0_16 = arith.constant 0 : index
    %25 = vector.load %arg9[%c0_14, %c0_15, %c0_16] : memref<1x1x32xf32, #tpu.memory_space<vmem>>, vector<1x1x32xf32>
    %26 = vector.shape_cast %25 : vector<1x1x32xf32> to vector<1x32xf32>
    %27 = vector.broadcast %26 : vector<1x32xf32> to vector<16x32xf32>
    %28 = arith.addf %24, %27 : vector<16x32xf32>
    %c0_17 = arith.constant 0 : index
    %c0_18 = arith.constant 0 : index
    %c0_19 = arith.constant 0 : index
    %29 = vector.load %arg10[%c0_17, %c0_18, %c0_19] : memref<1x96x32xbf16, #tpu.memory_space<vmem>>, vector<1x96x32xbf16>
    %30 = vector.shape_cast %29 : vector<1x96x32xbf16> to vector<96x32xbf16>
    %cst_20 = arith.constant dense<0.000000e+00> : vector<16x32xf32>
    %31 = tpu.matmul %21, %30, %cst_20 {dimension_numbers = #tpu.dot_dimension_numbers<[1], [0], [0], [1], [0, 0, 1, 1], [], []>} : vector<16x96xbf16>, vector<96x32xbf16>, vector<16x32xf32> -> vector<16x32xf32>
    %c0_21 = arith.constant 0 : index
    %c0_22 = arith.constant 0 : index
    %c0_23 = arith.constant 0 : index
    %32 = vector.load %arg11[%c0_21, %c0_22, %c0_23] : memref<1x1x32xf32, #tpu.memory_space<vmem>>, vector<1x1x32xf32>
    %33 = vector.shape_cast %32 : vector<1x1x32xf32> to vector<1x32xf32>
    %34 = vector.broadcast %33 : vector<1x32xf32> to vector<16x32xf32>
    %35 = arith.addf %31, %34 : vector<16x32xf32>
    %36 = math.tanh %28 : vector<16x32xf32>
    %37 = arith.negf %35 : vector<16x32xf32>
    %38 = math.exp %37 : vector<16x32xf32>
    %cst_24 = arith.constant 1.000000e+00 : f32
    %39 = vector.broadcast %cst_24 : f32 to vector<16x32xf32>
    %40 = arith.addf %39, %38 : vector<16x32xf32>
    %41 = arith.divf %39, %40 : vector<16x32xf32>
    %42 = arith.mulf %36, %41 : vector<16x32xf32>
    %43 = arith.truncf %42 : vector<16x32xf32> to vector<16x32xbf16>
    %c0_25 = arith.constant 0 : index
    %c0_26 = arith.constant 0 : index
    %c0_27 = arith.constant 0 : index
    %44 = vector.load %arg14[%c0_25, %c0_26, %c0_27] : memref<1x32x32xbf16, #tpu.memory_space<vmem>>, vector<1x32x32xbf16>
    %45 = vector.shape_cast %44 : vector<1x32x32xbf16> to vector<32x32xbf16>
    %cst_28 = arith.constant dense<0.000000e+00> : vector<16x32xf32>
    %46 = tpu.matmul %43, %45, %cst_28 {dimension_numbers = #tpu.dot_dimension_numbers<[1], [0], [0], [1], [0, 0, 1, 1], [], []>} : vector<16x32xbf16>, vector<32x32xbf16>, vector<16x32xf32> -> vector<16x32xf32>
    %c0_29 = arith.constant 0 : index
    %c0_30 = arith.constant 0 : index
    %c0_31 = arith.constant 0 : index
    %47 = vector.load %arg15[%c0_29, %c0_30, %c0_31] : memref<1x1x32xf32, #tpu.memory_space<vmem>>, vector<1x1x32xf32>
    %48 = vector.shape_cast %47 : vector<1x1x32xf32> to vector<1x32xf32>
    %49 = vector.broadcast %48 : vector<1x32xf32> to vector<16x32xf32>
    %50 = arith.addf %46, %49 : vector<16x32xf32>
    %c0_32 = arith.constant 0 : index
    %c0_33 = arith.constant 0 : index
    %51 = vector.load %arg24[%c0_32, %c0_33] : memref<16x32xf32, #tpu.memory_space<vmem>>, vector<16x32xf32>
    %52 = arith.addf %51, %50 : vector<16x32xf32>
    %c0_34 = arith.constant 0 : index
    %c0_35 = arith.constant 0 : index
    %53 = vector.load %arg24[%c0_34, %c0_35] : memref<16x32xf32, #tpu.memory_space<vmem>>, vector<16x32xf32>
    tpu.vector_store %arg24[%c0_34, %c0_35], %52 {strides = array<i32>} : memref<16x32xf32, #tpu.memory_space<vmem>>, vector<16x32xf32>,
    %c1_i32_36 = arith.constant 1 : i32
    %54 = arith.cmpi slt, %arg1, %c1_i32_36 : i32
    %55 = arith.extui %54 : i1 to i32
    %c0_i32_37 = arith.constant 0 : i32
    %56 = arith.cmpi ne, %55, %c0_i32_37 : i32
    scf.if %56 {
      %c0_40 = arith.constant 0 : index
      %c0_41 = arith.constant 0 : index
      %c0_42 = arith.constant 0 : index
      %60 = vector.load %arg12[%c0_40, %c0_41, %c0_42] : memref<1x32x32xbf16, #tpu.memory_space<vmem>>, vector<1x32x32xbf16>
      %61 = vector.shape_cast %60 : vector<1x32x32xbf16> to vector<32x32xbf16>
      %cst_43 = arith.constant dense<0.000000e+00> : vector<16x32xf32>
      %62 = tpu.matmul %43, %61, %cst_43 {dimension_numbers = #tpu.dot_dimension_numbers<[1], [0], [0], [1], [0, 0, 1, 1], [], []>} : vector<16x32xbf16>, vector<32x32xbf16>, vector<16x32xf32> -> vector<16x32xf32>
      %c0_44 = arith.constant 0 : index
      %c0_45 = arith.constant 0 : index
      %c0_46 = arith.constant 0 : index
      %63 = vector.load %arg13[%c0_44, %c0_45, %c0_46] : memref<1x1x32xf32, #tpu.memory_space<vmem>>, vector<1x1x32xf32>
      %64 = vector.shape_cast %63 : vector<1x1x32xf32> to vector<1x32xf32>
      %65 = vector.broadcast %64 : vector<1x32xf32> to vector<16x32xf32>
      %66 = arith.addf %62, %65 : vector<16x32xf32>
      %c0_47 = arith.constant 0 : index
      %c0_48 = arith.constant 0 : index
      %67 = vector.load %arg23[%c0_47, %c0_48] : memref<16x32xf32, #tpu.memory_space<vmem>>, vector<16x32xf32>
      %68 = arith.addf %67, %66 : vector<16x32xf32>
      %69 = vector.broadcast %3 : vector<16x1xf32> to vector<16x32xf32>
      %70 = arith.mulf %68, %69 : vector<16x32xf32>
      %c0_49 = arith.constant 0 : index
      %c0_50 = arith.constant 0 : index
      %71 = vector.load %arg23[%c0_49, %c0_50] : memref<16x32xf32, #tpu.memory_space<vmem>>, vector<16x32xf32>
      tpu.vector_store %arg23[%c0_49, %c0_50], %70 {strides = array<i32>} : memref<16x32xf32, #tpu.memory_space<vmem>>, vector<16x32xf32>,
    } else {
    }
    %c1_i32_38 = arith.constant 1 : i32
    %57 = arith.cmpi eq, %arg1, %c1_i32_38 : i32
    %58 = arith.extui %57 : i1 to i32
    %c0_i32_39 = arith.constant 0 : i32
    %59 = arith.cmpi ne, %58, %c0_i32_39 : i32
    scf.if %59 {
      %c0_40 = arith.constant 0 : index
      %c0_41 = arith.constant 0 : index
      %60 = vector.load %arg24[%c0_40, %c0_41] : memref<16x32xf32, #tpu.memory_space<vmem>>, vector<16x32xf32>
      %61 = vector.broadcast %3 : vector<16x1xf32> to vector<16x32xf32>
      %62 = arith.mulf %60, %61 : vector<16x32xf32>
      %63 = arith.truncf %62 : vector<16x32xf32> to vector<16x32xbf16>
      %c0_42 = arith.constant 0 : index
      %c0_43 = arith.constant 0 : index
      %64 = vector.load %arg16[%c0_42, %c0_43] : memref<32x32xbf16, #tpu.memory_space<vmem>>, vector<32x32xbf16>
      %cst_44 = arith.constant dense<0.000000e+00> : vector<16x32xf32>
      %65 = tpu.matmul %63, %64, %cst_44 {dimension_numbers = #tpu.dot_dimension_numbers<[1], [0], [0], [1], [0, 0, 1, 1], [], []>} : vector<16x32xbf16>, vector<32x32xbf16>, vector<16x32xf32> -> vector<16x32xf32>
      %c0_45 = arith.constant 0 : index
      %c0_46 = arith.constant 0 : index
      %66 = vector.load %arg17[%c0_45, %c0_46] : memref<1x32xf32, #tpu.memory_space<vmem>>, vector<1x32xf32>
      %67 = vector.broadcast %66 : vector<1x32xf32> to vector<16x32xf32>
      %68 = arith.addf %65, %67 : vector<16x32xf32>
      %69 = vector.broadcast %3 : vector<16x1xf32> to vector<16x32xf32>
      %70 = arith.mulf %68, %69 : vector<16x32xf32>
      %c0_47 = arith.constant 0 : index
      %c0_48 = arith.constant 0 : index
      %71 = vector.load %arg18[%c0_47, %c0_48] : memref<32x32xbf16, #tpu.memory_space<vmem>>, vector<32x32xbf16>
      %cst_49 = arith.constant dense<0.000000e+00> : vector<16x32xf32>
      %72 = tpu.matmul %63, %71, %cst_49 {dimension_numbers = #tpu.dot_dimension_numbers<[1], [0], [0], [1], [0, 0, 1, 1], [], []>} : vector<16x32xbf16>, vector<32x32xbf16>, vector<16x32xf32> -> vector<16x32xf32>
      %c0_50 = arith.constant 0 : index
      %c0_51 = arith.constant 0 : index
      %73 = vector.load %arg19[%c0_50, %c0_51] : memref<1x32xf32, #tpu.memory_space<vmem>>, vector<1x32xf32>
      %74 = vector.broadcast %73 : vector<1x32xf32> to vector<16x32xf32>
      %75 = arith.addf %72, %74 : vector<16x32xf32>
      %76 = vector.broadcast %3 : vector<16x1xf32> to vector<16x32xf32>
      %77 = arith.mulf %75, %76 : vector<16x32xf32>
      %78 = math.exp %77 : vector<16x32xf32>
      %c0_52 = arith.constant 0 : index
      %c0_53 = arith.constant 0 : index
      %c0_54 = arith.constant 0 : index
      %79 = vector.load %arg5[%c0_52, %c0_53, %c0_54] : memref<1x16x32xf32, #tpu.memory_space<vmem>>, vector<1x16x32xf32>
      %80 = vector.shape_cast %79 : vector<1x16x32xf32> to vector<16x32xf32>
      %81 = arith.mulf %78, %80 : vector<16x32xf32>
      %82 = arith.addf %70, %81 : vector<16x32xf32>
      %83 = vector.broadcast %3 : vector<16x1xf32> to vector<16x32xf32>
      %84 = arith.mulf %82, %83 : vector<16x32xf32>
      %c0_55 = arith.constant 0 : index
      %c0_56 = arith.constant 0 : index
      %c0_57 = arith.constant 0 : index
      %85 = vector.load %arg20[%c0_55, %c0_56, %c0_57] : memref<1x16x32xf32, #tpu.memory_space<vmem>>, vector<1x16x32xf32>
      %86 = vector.shape_cast %85 : vector<1x16x32xf32> to vector<16x32xf32>
      %87 = vector.shape_cast %70 : vector<16x32xf32> to vector<1x16x32xf32>
      tpu.vector_store %arg20[%c0_55, %c0_56, %c0_57], %87 {strides = array<i32>} : memref<1x16x32xf32, #tpu.memory_space<vmem>>, vector<1x16x32xf32>,
      %c0_58 = arith.constant 0 : index
      %c0_59 = arith.constant 0 : index
      %c0_60 = arith.constant 0 : index
      %88 = vector.load %arg21[%c0_58, %c0_59, %c0_60] : memref<1x16x32xf32, #tpu.memory_space<vmem>>, vector<1x16x32xf32>
      %89 = vector.shape_cast %88 : vector<1x16x32xf32> to vector<16x32xf32>
      %90 = vector.shape_cast %77 : vector<16x32xf32> to vector<1x16x32xf32>
      tpu.vector_store %arg21[%c0_58, %c0_59, %c0_60], %90 {strides = array<i32>} : memref<1x16x32xf32, #tpu.memory_space<vmem>>, vector<1x16x32xf32>,
      %c0_61 = arith.constant 0 : index
      %c0_62 = arith.constant 0 : index
      %c0_63 = arith.constant 0 : index
      %91 = vector.load %arg22[%c0_61, %c0_62, %c0_63] : memref<1x16x32xf32, #tpu.memory_space<vmem>>, vector<1x16x32xf32>
      %92 = vector.shape_cast %91 : vector<1x16x32xf32> to vector<16x32xf32>
      %93 = vector.shape_cast %84 : vector<16x32xf32> to vector<1x16x32xf32>
      tpu.vector_store %arg22[%c0_61, %c0_62, %c0_63], %93 {strides = array<i32>} : memref<1x16x32xf32, #tpu.memory_space<vmem>>, vector<1x16x32xf32>,
    } else {
    }
    return
  }
  func.func @transform_0(%arg0: i32, %arg1: i32, %arg2: memref<2xi32, #tpu.memory_space<smem>>, %arg3: memref<2xi32, #tpu.memory_space<smem>>) -> (i32, i32, i32) {
    %c0_i32 = arith.constant 0 : i32
    %c0_i32_0 = arith.constant 0 : i32
    %c0_i32_1 = arith.constant 0 : i32
    return %arg0, %c0_i32, %c0_i32_0 : i32, i32, i32
  }
  func.func @transform_1(%arg0: i32, %arg1: i32, %arg2: memref<2xi32, #tpu.memory_space<smem>>, %arg3: memref<2xi32, #tpu.memory_space<smem>>) -> (i32, i32, i32) {
    %c0_i32 = arith.constant 0 : i32
    %c0_i32_0 = arith.constant 0 : i32
    %c0_i32_1 = arith.constant 0 : i32
    return %arg0, %c0_i32, %c0_i32_0 : i32, i32, i32
  }
  func.func @transform_2(%arg0: i32, %arg1: i32, %arg2: memref<2xi32, #tpu.memory_space<smem>>, %arg3: memref<2xi32, #tpu.memory_space<smem>>) -> (i32, i32) {
    %c0_i32 = arith.constant 0 : i32
    %c0_i32_0 = arith.constant 0 : i32
    %c0_i32_1 = arith.constant 0 : i32
    return %c0_i32, %c0_i32_0 : i32, i32
  }
  func.func @transform_3(%arg0: i32, %arg1: i32, %arg2: memref<2xi32, #tpu.memory_space<smem>>, %arg3: memref<2xi32, #tpu.memory_space<smem>>) -> (i32, i32) {
    %c0_i32 = arith.constant 0 : i32
    %c0_i32_0 = arith.constant 0 : i32
    %c0_i32_1 = arith.constant 0 : i32
    return %c0_i32, %c0_i32_0 : i32, i32
  }
  func.func @transform_4(%arg0: i32, %arg1: i32, %arg2: memref<2xi32, #tpu.memory_space<smem>>, %arg3: memref<2xi32, #tpu.memory_space<smem>>) -> (i32, i32, i32) {
    %c0_i32 = arith.constant 0 : i32
    %c0_i32_0 = arith.constant 0 : i32
    %c0_i32_1 = arith.constant 0 : i32
    return %arg1, %c0_i32, %c0_i32_0 : i32, i32, i32
  }
  func.func @transform_5(%arg0: i32, %arg1: i32, %arg2: memref<2xi32, #tpu.memory_space<smem>>, %arg3: memref<2xi32, #tpu.memory_space<smem>>) -> (i32, i32, i32) {
    %c0_i32 = arith.constant 0 : i32
    %c0_i32_0 = arith.constant 0 : i32
    %c0_i32_1 = arith.constant 0 : i32
    return %arg1, %c0_i32, %c0_i32_0 : i32, i32, i32
  }
  func.func @transform_6(%arg0: i32, %arg1: i32, %arg2: memref<2xi32, #tpu.memory_space<smem>>, %arg3: memref<2xi32, #tpu.memory_space<smem>>) -> (i32, i32, i32) {
    %c0_i32 = arith.constant 0 : i32
    %c0_i32_0 = arith.constant 0 : i32
    %c0_i32_1 = arith.constant 0 : i32
    return %arg1, %c0_i32, %c0_i32_0 : i32, i32, i32
  }
  func.func @transform_7(%arg0: i32, %arg1: i32, %arg2: memref<2xi32, #tpu.memory_space<smem>>, %arg3: memref<2xi32, #tpu.memory_space<smem>>) -> (i32, i32, i32) {
    %c0_i32 = arith.constant 0 : i32
    %c0_i32_0 = arith.constant 0 : i32
    %c0_i32_1 = arith.constant 0 : i32
    return %arg1, %c0_i32, %c0_i32_0 : i32, i32, i32
  }
  func.func @transform_8(%arg0: i32, %arg1: i32, %arg2: memref<2xi32, #tpu.memory_space<smem>>, %arg3: memref<2xi32, #tpu.memory_space<smem>>) -> (i32, i32, i32) {
    %c0_i32 = arith.constant 0 : i32
    %c0_i32_0 = arith.constant 0 : i32
    %c0_i32_1 = arith.constant 0 : i32
    return %arg1, %c0_i32, %c0_i32_0 : i32, i32, i32
  }
  func.func @transform_9(%arg0: i32, %arg1: i32, %arg2: memref<2xi32, #tpu.memory_space<smem>>, %arg3: memref<2xi32, #tpu.memory_space<smem>>) -> (i32, i32, i32) {
    %c0_i32 = arith.constant 0 : i32
    %c0_i32_0 = arith.constant 0 : i32
    %c0_i32_1 = arith.constant 0 : i32
    return %arg1, %c0_i32, %c0_i32_0 : i32, i32, i32
  }
  func.func @transform_10(%arg0: i32, %arg1: i32, %arg2: memref<2xi32, #tpu.memory_space<smem>>, %arg3: memref<2xi32, #tpu.memory_space<smem>>) -> (i32, i32, i32) {
    %c0_i32 = arith.constant 0 : i32
    %c0_i32_0 = arith.constant 0 : i32
    %c0_i32_1 = arith.constant 0 : i32
    return %arg1, %c0_i32, %c0_i32_0 : i32, i32, i32
  }
  func.func @transform_11(%arg0: i32, %arg1: i32, %arg2: memref<2xi32, #tpu.memory_space<smem>>, %arg3: memref<2xi32, #tpu.memory_space<smem>>) -> (i32, i32, i32) {
    %c0_i32 = arith.constant 0 : i32
    %c0_i32_0 = arith.constant 0 : i32
    %c0_i32_1 = arith.constant 0 : i32
    return %arg1, %c0_i32, %c0_i32_0 : i32, i32, i32
  }
  func.func @transform_12(%arg0: i32, %arg1: i32, %arg2: memref<2xi32, #tpu.memory_space<smem>>, %arg3: memref<2xi32, #tpu.memory_space<smem>>) -> (i32, i32) {
    %c0_i32 = arith.constant 0 : i32
    %c0_i32_0 = arith.constant 0 : i32
    %c0_i32_1 = arith.constant 0 : i32
    return %c0_i32, %c0_i32_0 : i32, i32
  }
  func.func @transform_13(%arg0: i32, %arg1: i32, %arg2: memref<2xi32, #tpu.memory_space<smem>>, %arg3: memref<2xi32, #tpu.memory_space<smem>>) -> (i32, i32) {
    %c0_i32 = arith.constant 0 : i32
    %c0_i32_0 = arith.constant 0 : i32
    %c0_i32_1 = arith.constant 0 : i32
    return %c0_i32, %c0_i32_0 : i32, i32
  }
  func.func @transform_14(%arg0: i32, %arg1: i32, %arg2: memref<2xi32, #tpu.memory_space<smem>>, %arg3: memref<2xi32, #tpu.memory_space<smem>>) -> (i32, i32) {
    %c0_i32 = arith.constant 0 : i32
    %c0_i32_0 = arith.constant 0 : i32
    %c0_i32_1 = arith.constant 0 : i32
    return %c0_i32, %c0_i32_0 : i32, i32
  }
  func.func @transform_15(%arg0: i32, %arg1: i32, %arg2: memref<2xi32, #tpu.memory_space<smem>>, %arg3: memref<2xi32, #tpu.memory_space<smem>>) -> (i32, i32) {
    %c0_i32 = arith.constant 0 : i32
    %c0_i32_0 = arith.constant 0 : i32
    %c0_i32_1 = arith.constant 0 : i32
    return %c0_i32, %c0_i32_0 : i32, i32
  }
  func.func @transform_16(%arg0: i32, %arg1: i32, %arg2: memref<2xi32, #tpu.memory_space<smem>>, %arg3: memref<2xi32, #tpu.memory_space<smem>>) -> (i32, i32, i32) {
    %c0_i32 = arith.constant 0 : i32
    %c0_i32_0 = arith.constant 0 : i32
    %c0_i32_1 = arith.constant 0 : i32
    return %arg0, %c0_i32, %c0_i32_0 : i32, i32, i32
  }
  func.func @transform_17(%arg0: i32, %arg1: i32, %arg2: memref<2xi32, #tpu.memory_space<smem>>, %arg3: memref<2xi32, #tpu.memory_space<smem>>) -> (i32, i32, i32) {
    %c0_i32 = arith.constant 0 : i32
    %c0_i32_0 = arith.constant 0 : i32
    %c0_i32_1 = arith.constant 0 : i32
    return %arg0, %c0_i32, %c0_i32_0 : i32, i32, i32
  }
  func.func @transform_18(%arg0: i32, %arg1: i32, %arg2: memref<2xi32, #tpu.memory_space<smem>>, %arg3: memref<2xi32, #tpu.memory_space<smem>>) -> (i32, i32, i32) {
    %c0_i32 = arith.constant 0 : i32
    %c0_i32_0 = arith.constant 0 : i32
    %c0_i32_1 = arith.constant 0 : i32
    return %arg0, %c0_i32, %c0_i32_0 : i32, i32, i32
  }
}

</mosaic_0001>

<bundles_post_ra>
// kernel: tpu_custom_call.1
= control target key start
LH: loop header
LB: loop body
LE: loop exit
PB: predicated region body
PF: predicated region fallthrough
CT: control target
= control target key end

     0   :  { %s2779_s0 = inlined_call_operand.vmem [shape: s32[2], index: 0, kind: input, shape index: {}]   ;;  %s2780_s2 = inlined_call_operand.vmem [shape: f32[2,16,4], index: 2, kind: input, shape index: {}]   ;;  %s2781_s3 = inlined_call_operand.vmem [shape: f32[2,16,32], index: 3, kind: input, shape index: {}]   ;;  %s2782_s4 = inlined_call_operand.vmem [shape: bf16[4,32], index: 4, kind: input, shape index: {}]   ;;  %s2783_s5 = inlined_call_operand.vmem [shape: f32[1,32], index: 5, kind: input, shape index: {}]   ;;  %s2784_s6 = inlined_call_operand.vmem [shape: bf16[2,96,32], index: 6, kind: input, shape index: {}]   ;;  %s2785_s7 = inlined_call_operand.vmem [shape: f32[2,1,32], index: 7, kind: input, shape index: {}]   ;;  %s2786_s8 = inlined_call_operand.vmem [shape: bf16[2,96,32], index: 8, kind: input, shape index: {}]   ;;  %s2787_s9 = inlined_call_operand.vmem [shape: f32[2,1,32], index: 9, kind: input, shape index: {}]   ;;  %s2788_s10 = inlined_call_operand.vmem [shape: bf16[2,32,32], index: 10, kind: input, shape index: {}]   ;;  %s2789_s11 = inlined_call_operand.vmem [shape: f32[2,1,32], index: 11, kind: input, shape index: {}]   ;;  %s2790_s12 = inlined_call_operand.vmem [shape: bf16[2,32,32], index: 12, kind: input, shape index: {}]   ;;  %s2791_s13 = inlined_call_operand.vmem [shape: f32[2,1,32], index: 13, kind: input, shape index: {}]   ;;  %s2792_s14 = inlined_call_operand.vmem [shape: bf16[32,32], index: 14, kind: input, shape index: {}]   ;;  %s2793_s15 = inlined_call_operand.vmem [shape: f32[1,32], index: 15, kind: input, shape index: {}]   ;;  %s2794_s16 = inlined_call_operand.vmem [shape: bf16[32,32], index: 16, kind: input, shape index: {}]   ;;  %s2795_s17 = inlined_call_operand.vmem [shape: f32[1,32], index: 17, kind: input, shape index: {}]   ;;  %s2796_s18 = inlined_call_operand.hbm [shape: f32[2,16,32], index: 18, kind: output, shape index: {0}]   ;;  %s2797_s19 = inlined_call_operand.hbm [shape: f32[2,16,32], index: 19, kind: output, shape index: {1}]   ;;  %s2798_s20 = inlined_call_operand.hbm [shape: f32[2,16,32], index: 20, kind: output, shape index: {2}]   ;;  %s2799_s1 = inlined_call_operand.vmem [shape: s32[2], index: 1, kind: input, shape index: {}]  }
   0x1   :  { %2820 = sst [smem:[#allocation28_spill]] %s2779_s0  ;;  %s30_s25 = sshll.u32 %s2799_s1, 4  ;;  %s31_s25 = int_to_ptr.vmem [resolvable:$true] %s30_s25 }
   0x2   :  { %2821 = sst [smem:[#allocation29_spill]] %s2780_s2  ;;  %s2834_s23 = sld [smem:[#allocation28_spill]] }
   0x3   :  { %2822 = sst [smem:[#allocation30_spill]] %s2781_s3 }
   0x4   :  { %2823 = sst [smem:[#allocation31_spill]] %s2782_s4 }
   0x5   :  { %2824 = sst [smem:[#allocation32_spill]] %s2783_s5 }
   0x6   :  { %2825 = sst [smem:[#allocation33_spill]] %s2784_s6 }
   0x7   :  { %2826 = sst [smem:[#allocation34_spill]] %s2785_s7 }
   0x8   :  { %2827 = sst [smem:[#allocation35_spill]] %s2792_s14 }
   0x9   :  { %2828 = sst [smem:[#allocation36_spill]] %s2793_s15  ;;  %s26_s15 = sshll.u32 %s2834_s23, 4  ;;  %s27_s15 = int_to_ptr.vmem [resolvable:$true] %s26_s15 }
   0xa   :  { %2829 = sst [smem:[#allocation37_spill]] %s2794_s16  ;;  %s2056_s4 = scalar_lea.vmem %s27_s15, 16 }
   0xb   :  { %2830 = sst [smem:[#allocation38_spill]] %s2795_s17  ;;  %p2057_p0 = scmp.ne.s32.totalorder %s27_s15, %s2056_s4 }
   0xc   :  { %2831 = sst [smem:[#allocation39_spill]] %s2796_s18  ;;  %p2061_p1 = scmp.lt.s32.totalorder %s27_s15, %s27_s15 }
   0xd   :  { %2832 = sst [smem:[#allocation40_spill]] %s2797_s19  ;;  %p2062_p2 = scmp.lt.s32.totalorder %s2056_s4, %s2056_s4 }
   0xe   :  { %2833 = sst [smem:[#allocation41_spill]] %s2798_s20 }
   0xf   :  { %p2063_p3 = por %p2062_p2, %p2061_p1 }
  0x11   :  { %p2064_p4 = pnand %p2063_p3, %p2057_p0 }
  0x13   :  { %2067 = shalt.err (!%p2064_p4)  }
  0x14   :  { %s2238_s26 = smov [#allocation7]   ;;  %s2068_s27 = scalar_lea.vmem %s31_s25, 16 }
  0x15   :  { %29 = dma.vmem_to_smem %s27_s15, 16, %s2238_s26, [#allocation6] }
  0x16   :  { %p2069_p5 = scmp.ne.s32.totalorder %s31_s25, %s2068_s27  ;;  %p2073_p6 = scmp.lt.s32.totalorder %s31_s25, %s31_s25 }
  0x17   :  { %p2074_p7 = scmp.lt.s32.totalorder %s2068_s27, %s2068_s27 }
  0x19   :  { %p2075_p8 = por %p2074_p7, %p2073_p6 }
  0x1b   :  { %p2076_p9 = pnand %p2075_p8, %p2069_p5 }
  0x1d   :  { %2079 = shalt.err (!%p2076_p9)  }
  0x1e   :  { %s2239_s28 = smov [#allocation8]  }
  0x1f   :  { %33 = dma.vmem_to_smem %s31_s25, 16, %s2239_s28, [#allocation6] }
  0x20   :  { %2196 = dma.done.wait [#allocation6], 32 }
  0x21   :  { %2197 = vsyncadd [#allocation6], 4294967264 }
  0x22   :  { %35 = sfence }
  0x23   :  { %36 = vsyncpa [#allocation10], 0 }
  0x24   :  { %38 = vsyncpa [#allocation10 + $0x1], 0 }
  0x25   :  { %39 = vsyncpa [#allocation12], 0 }
  0x26   :  { %41 = vsyncpa [#allocation12 + $0x1], 0  ;;  %s2368_s1 = smov 0   ;;  %s2370_s5 = smov 0  }
  0x27   :  { %s2372_s15 = smov 0   ;;  %s2374_s29 = smov 0  }
  0x28   :  { %s2376_s30 = smov 0   ;;  %s2378_s0 = smov 0  }
  0x29   :  { %s2380_s21 = smov 0   ;;  %s2382_s2 = smov 0  }
  0x2a LB: > { %2835 = sst [smem:[#allocation17_spill]] %s2208_s1  ;;  %s2801_s22 = sadd.s32 4294967295, %s2236_s2   ;;  %s2236_s2 = sphi %s2382_s2, %s47_s2   ;;  %s2232_s21 = sphi %s2380_s21, %s2882_s21   ;;  %s2228_s0 = sphi %s2378_s0, %s2881_s0   ;;  %s2224_s30 = sphi %s2376_s30, %s2880_s30   ;;  %s2220_s29 = sphi %s2374_s29, %s2879_s29   ;;  %s2216_s15 = sphi %s2372_s15, %s2878_s15   ;;  %s2212_s5 = sphi %s2370_s5, %s2877_s5   ;;  %s2208_s1 = sphi %s2368_s1, %s2876_s1  }
  0x2b   : > { %2836 = sst [smem:[#allocation18_spill]] %s2212_s5  ;;  %s2800_s23 = sadd.s32 4294967294, %s2236_s2  }
  0x2c   : > { %2837 = sst [smem:[#allocation19_spill]] %s2216_s15  ;;  %s56_s24 = sadd.s32 1, %s2228_s0 }
  0x2d   : > { %2838 = sst [smem:[#allocation20_spill]] %s2228_s0  ;;  %p57_p10 = scmp.ge.s32.totalorder %s56_s24, 2 }
  0x2e   : > { %2839 = sst [smem:[#allocation21_spill]] %s2232_s21  ;;  %s59_s3 = sadd.s32 1, %s2232_s21 }
  0x2f   : > { %2840 = sst [smem:[#allocation22_spill]] %s2236_s2  ;;  %p462_p11 = scmp.ne.s32.totalorder %s2216_s15, %s2212_s5 }
  0x30   : > { %p463_p12 = scmp.eq.s32.totalorder %s2801_s22, 3  ;;  %s2884_s24 = smov (%p57_p10, %s56_s24), 0 }
  0x31   : > { %2841 = sst [smem:[#allocation23_spill]] %s2884_s24  ;;  %s2886_s3 = smov (!%p57_p10, %s59_s3), %s2232_s21 }
  0x32   : > { %p2419_p13 = por %p463_p12, %p462_p11  ;;  %p468_p0 = scmp.ne.s32.totalorder %s2212_s5, %s2208_s1 }
  0x33   : > { %p61_p1 = scmp.ge.s32.totalorder %s2886_s3, 2  ;;  %p469_p2 = scmp.eq.s32.totalorder %s2800_s23, 3 }
  0x34   : > { %s2842_s25 = scalar_select %p2419_p13, 1, 0 }
  0x35   : > { %p1737_p3 = scmp.ge.s32.totalorder %s2236_s2, 1  ;;  %p629_p4 = scmp.lt.s32.totalorder %s2236_s2, 5 }
  0x36   : > { %2843 = sst [smem:[#allocation24_spill]] %s2842_s25  ;;  %s2888_s3 = smov (%p61_p1, %s2886_s3), 0 }
  0x37   : > { %2844 = sst [smem:[#allocation25_spill]] %s2888_s3  ;;  %p2431_p5 = por %p469_p2, %p468_p0 }
  0x38   : > { %p630_p6 = pnand %p1737_p3, %p629_p4  ;;  %s449_s26 = ssub.s32 %s2232_s21, %s2888_s3 }
  0x39   : > { %s2845_s4 = scalar_select %p2431_p5, 1, 0 }
  0x3a   : > { %s452_s27 = sadd.s32 1, %s2216_s15  ;;  %p450_p7 = scmp.eq.s32.totalorder %s449_s26, 0 }
  0x3b   : > { %2846 = sst [smem:[#allocation26_spill]] %s2845_s4  ;;  %633 = sbr.rel (%p630_p6) target bundleno = 1376 (0x560), region = 84 }
  0x3c   : > { %s2439_s28 = scalar_select %p450_p7, %s2216_s15, %s452_s27  }
  0x3d   : > { %s2809_s23 = sand.u32 (!%p630_p6), 1, %s2212_s5   ;;  %p730_p8 = scmp.lt.s32.totalorder (!%p630_p6), %s2224_s30, 1 }
  0x3e   : > { %2847 = sst [smem:[#allocation27_spill]] %s2439_s28  ;;  %s1738_s22 = sshll.u32 (!%p630_p6), %s2809_s23, 4 }
  0x3f   : > { %p740_p9 = scmp.lt.s32.totalorder (!%p630_p6), %s2220_s29, 1  ;;  %s2848_s21 = sld [smem:[#allocation29_spill]] (!%p630_p6) }
  0x40   : > { %s2849_s1 = sld [smem:[#allocation30_spill]] (!%p630_p6)  ;;  %s2851_s6 = sld [smem:[#allocation33_spill]] (!%p630_p6) }
  0x41   : > { %s2498_s27 = scalar_lea.vmem (!%p630_p6), [#allocation11], %s1738_s22  ;;  %s2500_s15 = scalar_lea.vmem (!%p630_p6), [#allocation13], %s1738_s22 }
  0x42   : > { %s731_s24 = scalar_select %p730_p8, %s2224_s30, 1 }
  0x43   : > { %s2448_s0 = scalar_select %p740_p9, %s2220_s29, 1 }
  0x44   : > { %s1805_s26 = sshll.u32 %s731_s24, 4  ;;  %p1751_p10 = scmp.ne.s32.totalorder %s2220_s29, 0 }
  0x45   : > { %s734_s28 = scalar_lea.vmem %s2848_s21, %s1805_s26  ;;  %s1910_s23 = smul.u32 48, %s2448_s0  ;;  %vm806_vm0 = vcmask (!%p1751_p10), 1041408   ;;  %v778_v2 = vlaneseq (!%p1751_p10)  ;;  %v2240_v3 = vmov (!%p1751_p10), 0.0   ;;  %vm2241_vm1 = vmmov (!%p1751_p10), 0  }
  0x46   : > { %s2456_s20 = scalar_lea.vmem %s2849_s1, %s1805_s26  ;;  %s1807_s16 = sshll.u32 %s2448_s0, 4  ;;  %v791_v1 = vld [vmem:[%s734_s28] sm:$0xff] (!%p1751_p10)  ;;  %1840 = vmatprep.subr.bf16.mxu0 (!%p1751_p10), %v2240_v3  ;;  %1842 = vmatprep.mubr.msk.bf16.mxu0 (!%p1751_p10), %vm2241_vm1, %v2240_v3  ;;  %v792_v5 = vld [vmem:[%s734_s28 + $0x8] sm:$0xff] (!%p1751_p10)  ;;  %vm802_vm2 = vcmask (!%p1751_p10), 31744   ;;  %vm788_vm3 = vcmask (!%p1751_p10), 7168   ;;  %vm853_vm5 = vcmask (!%p1751_p10), 261120  }
  0x47   : > { %s2471_s3 = scalar_lea.vmem %s2851_s6, %s1910_s23  ;;  %s2476_s1 = scalar_lea.vmem %s2786_s8, %s1910_s23  ;;  %v793_v6 = vpack.c.bf16 (!%p1751_p10), %v792_v5, %v791_v1  ;;  %v779_v7 = vshrl.u32 (!%p1751_p10), %v778_v2, 7  ;;  %856 = vst.msk [vmem:[#allocation3] sm:$0xff] (!%p1751_p10), %vm853_vm5, %v2240_v3  ;;  %857 = vst.msk [vmem:[#allocation3 + $0x8] sm:$0xff] (!%p1751_p10), %vm853_vm5, %v2240_v3 }
  0x48   : > { %s2481_s18 = scalar_lea.vmem %s2788_s10, %s1807_s16  ;;  %s763_s2 = scalar_lea.vmem %s2789_s11, %s2448_s0  ;;  %858 = vst.msk [vmem:[#allocation4] sm:$0xff] (!%p1751_p10), %vm853_vm5, %v2240_v3  ;;  %859 = vst.msk [vmem:[#allocation4 + $0x18] sm:$0xff] (!%p1751_p10), %vm853_vm5, %v2240_v3 }
  0x49   : > { %s2490_s14 = scalar_lea.vmem %s2790_s12, %s1807_s16  ;;  %s771_s21 = scalar_lea.vmem %s2791_s13, %s2448_s0  ;;  %v780_v10 = vadd.s32 (!%p1751_p10), 8, %v779_v7 }
  0x4a   : > { %s2496_s23 = scalar_lea.vmem [#allocation9], %s1738_s22  ;;  %776 = sbr.rel (%p1751_p10) target bundleno = 305 (0x131), region = 88 }
  0x4b   : > { %s2852_s26 = sld [smem:[#allocation31_spill]] (!%p1751_p10)  ;;  %s2853_s22 = sld [smem:[#allocation32_spill]] (!%p1751_p10) }
  0x4c   : > { %s777_s16 = sld [smem:[#allocation7 + %s2224_s30]] (!%p1751_p10) }
  0x51   : > { %v794_v0 = vld [vmem:[%s2852_s26] sm:$0x3] }
  0x52   : > { %v808_v4 = vsel %vm806_vm0, %v794_v0, 0  ;;  %v781_v8 = vstv %s777_s16  ;;  %v1754_v12 = vld [vmem:[%s2853_s22] ss:$0 sm:$0xff] }
  0x53   : > { %1841 = vmatpush3.bf16.msra.mxu0 %v808_v4  ;;  %vm782_vm4 = vcmp.lt.s32.totalorder %v779_v7, %v781_v8  ;;  %vm783_vm6 = vcmp.lt.s32.totalorder %v780_v10, %v781_v8 }
  0x54   : > { %v1752_v9 = vsel %vm782_vm4, 1.0, %v2240_v3  ;;  %v1753_v11 = vsel %vm783_vm6, 1.0, %v2240_v3 }
  0x55   : > { %789 = vst.msk [vmem:[#allocation5] sm:$0xff] %vm788_vm3, %v1752_v9  ;;  %790 = vst.msk [vmem:[#allocation5 + $0x8] sm:$0xff] %vm788_vm3, %v1753_v11 }
  0x56   : > { %1843 = vmatmul.mubr.msk.bf16.vlgmr.msra.gmra.mrb[0].mxu0 %vm802_vm2, %v793_v6 }
 0x129   : > { %v844_v13 = vpop.f32.mrb[0].mxu0 }
 0x12a   : > { %v845_v14 = vadd.f32 %v1754_v12, %v844_v13  ;;  %v1844_v15 = vpop.f32.mrb[1].mxu0 }
 0x12b   : > { %v847_v16 = vpop.f32.mrb[2].mxu0 }
 0x12c   : > { %v851_v17 = vmul.f32 %v1752_v9, %v845_v14  ;;  %v848_v18 = vadd.f32 %v1754_v12, %v847_v16  ;;  %v1845_v19 = vpop.f32.mrb[3].mxu0 }
 0x12e   : > { %854 = vst.msk [vmem:[#allocation2] sm:$0xff] %vm853_vm5, %v851_v17  ;;  %v852_v20 = vmul.f32 %v1753_v11, %v848_v18 }
 0x130   : > { %855 = vst.msk [vmem:[#allocation2 + $0x8] sm:$0xff] %vm853_vm5, %v852_v20 }
 0x131 PF: > { %vm864_vm7 = vcmask 261120   ;;  %s2517_s28 = sld [smem:[#allocation8 + %s2220_s29]]  ;;  %v2519_v23 = vld [vmem:[#allocation5] sm:$0xff]  ;;  %v2523_v24 = vld [vmem:[#allocation5 + $0x8] sm:$0xff]  ;;  %v2242_v26 = vmov 0.0   ;;  %vm2243_vm8 = vmmov 0   ;;  %s2854_s16 = scalar_lea.vmem %s2787_s9, %s2448_s0 }
 0x132   : > { %v2018_v25 = vld [vmem:[%s2471_s3] sm:$0xff]   ;;  %1846 = vmatprep.subr.bf16.mxu0 %v2242_v26  ;;  %1862 = vmatprep.subr.bf16.mxu1 %v2242_v26  ;;  %v2020_v28 = vld [vmem:[%s2471_s3 + $0x8] sm:$0xff]   ;;  %v2022_v30 = vld [vmem:[%s2471_s3 + $0x10] sm:$0xff]   ;;  %s2244_s24 = smov 32   ;;  %s2245_s4 = smov 64   ;;  %vm896_vm9 = vcmask 523264  }
 0x133   : > { %1847 = vmatpush3.bf16.msra.mxu0 %v2018_v25  ;;  %v2019_v27 = vld [vmem:[%s2476_s1] sm:$0xff]   ;;  %v2021_v29 = vld [vmem:[%s2476_s1 + $0x8] sm:$0xff]   ;;  %1858 = vmatprep.mubr.msk.bf16.mxu0 %vm2243_vm8, %v2242_v26  ;;  %v2023_v36 = vld [vmem:[%s2476_s1 + $0x10] sm:$0xff]   ;;  %vm955_vm10 = vcmask 785408   ;;  %s2855_s7 = sld [smem:[#allocation34_spill]]  ;;  %p1780_p11 = scmp.ge.s32.totalorder %s2220_s29, 1 }
 0x134   : > { %1848 = vmatprep.subr.bf16.mxu0 %v2242_v26  ;;  %1863 = vmatpush3.bf16.msra.mxu1 %v2019_v27  ;;  %v2024_v38 = vld [vmem:[%s2471_s3 + $0x18] sm:$0xff]   ;;  %v2026_v40 = vld [vmem:[%s2471_s3 + $0x20] sm:$0xff]   ;;  %v2028_v42 = vld [vmem:[%s2471_s3 + $0x28] sm:$0xff]   ;;  %vm2247_vm11 = vmmov (!%p1780_p11), 0  }
 0x135   : > { %v862_v21 = vld [vmem:[#allocation2] sm:$0xff]  ;;  %1864 = vmatprep.subr.bf16.mxu1 %v2242_v26  ;;  %1874 = vmatprep.mubr.msk.bf16.mxu1 %vm2243_vm8, %v2242_v26  ;;  %v2025_v39 = vld [vmem:[%s2476_s1 + $0x18] sm:$0xff]   ;;  %v2029_v43 = vld [vmem:[%s2476_s1 + $0x28] sm:$0xff]  }
 0x136   : > { %865 = vst.msk [vmem:[#allocation4 + $0x8] sm:$0xff] %vm864_vm7, %v862_v21  ;;  %v2027_v41 = vld [vmem:[%s2476_s1 + $0x20] sm:$0xff]   ;;  %v2031_v58 = vld [vmem:[%s2490_s14 + $0x8] sm:$0xff]  }
 0x137   : > { %v863_v22 = vld [vmem:[#allocation2 + $0x8] sm:$0xff]  ;;  %1849 = vmatpush3.bf16.msra.mxu0 %v2020_v28  ;;  %s1603_s25 = scalar_lea.vmem [#allocation4], %s2517_s28  ;;  %s868_s5 = ssub.s32 8, %s2517_s28  ;;  %v2030_v57 = vld [vmem:[%s2490_s14] sm:$0xff]  }
 0x138   : > { %866 = vst.msk [vmem:[#allocation4 + $0x10] sm:$0xff] %vm864_vm7, %v863_v22  ;;  %1850 = vmatprep.subr.bf16.mxu0 %v2242_v26  ;;  %1865 = vmatpush3.bf16.msra.mxu1 %v2021_v29  ;;  %s869_s26 = scalar_lea.vmem [#allocation4], %s868_s5  ;;  %v1766_v59 = vld [vmem:[%s2854_s16] ss:$0 sm:$0xff] }
 0x139   : > { %1866 = vmatprep.subr.bf16.mxu1 %v2242_v26  ;;  %s2856_s19 = scalar_lea.vmem %s2855_s7, %s2448_s0  ;;  %v1776_v22 = vld [vmem:[%s771_s21] ss:$0 sm:$0xff] }
 0x13a   : > { %v1758_v8 = vld [vmem:[%s2856_s19] ss:$0 sm:$0xff] }
 0x13b   : > { %1851 = vmatpush3.bf16.msra.mxu0 %v2022_v30  ;;  %v1181_v30 = vld [vmem:[#allocation3 + $0x8] sm:$0xff] }
 0x13c   : > { %1852 = vmatprep.subr.bf16.mxu0 %v2242_v26  ;;  %1867 = vmatpush3.bf16.msra.mxu1 %v2023_v36  ;;  %v2246_v36 = vmov (!%p1780_p11), 0.0  }
 0x13d   : > { %v872_v31 = vld [vmem:[#allocation4 + $0x8] sm:$0xff]  ;;  %1868 = vmatprep.subr.bf16.mxu1 %v2242_v26 }
 0x13f   : > { %v873_v32 = vld [vmem:[#allocation4 + $0x10] sm:$0xff]  ;;  %v1756_v33 = vld [vmem:[%s1603_s25 + $0x8] sm:$0xff]  ;;  %1853 = vmatpush3.bf16.msra.mxu0 %v2024_v38  ;;  %v870_v47 = vld [vmem:[%s869_s26] sm:$0xff]  ;;  %v2248_v38 = vmov (!%p1780_p11), 0  }
 0x140   : > { %v2008_v34 = vpack.i.bf16 %v873_v32, %v872_v31  ;;  %v1757_v35 = vld [vmem:[%s1603_s25 + $0x10] sm:$0xff]  ;;  %1854 = vmatprep.subr.bf16.mxu0 %v2242_v26  ;;  %1869 = vmatpush3.bf16.msra.mxu1 %v2025_v39  ;;  %v871_v48 = vld [vmem:[%s869_s26 + $0x8] sm:$0xff]  ;;  %v1781_v39 = vld [vmem:[%s763_s2] ss:$0 sm:$0xff] (!%p1780_p11) }
 0x141   : > { %v2013_v37 = vpack.i.bf16 %v1757_v35, %v1756_v33  ;;  %1870 = vmatprep.subr.bf16.mxu1 %v2242_v26  ;;  %v2045_v35 = vld [vmem:[%s2481_s18] sm:$0xff] (!%p1780_p11)   ;;  %2044 = vset.pattern.permute.xlu0 (!%p1780_p11), %v2248_v38 }
 0x142   : > { %2009 = vrot.lane.b32.xlu0 %v2008_v34, %s2244_s24 }
 0x143   : > { %1855 = vmatpush3.bf16.msra.mxu0 %v2026_v40 }
 0x144   : > { %1856 = vmatprep.subr.bf16.mxu0 %v2242_v26  ;;  %1871 = vmatpush3.bf16.msra.mxu1 %v2027_v41 }
 0x145   : > { %1872 = vmatprep.subr.bf16.mxu1 %v2242_v26 }
 0x146   : > { %2014 = vrot.lane.b32.xlu0 %v2013_v37, %s2245_s4  ;;  %v2046_v37 = vld [vmem:[%s2481_s18 + $0x8] sm:$0xff] (!%p1780_p11)  }
 0x147   : > { %1857 = vmatpush3.bf16.msra.mxu0 %v2028_v42  ;;  %v1254_v42 = vld [vmem:[#allocation2] sm:$0xff] (!%p1780_p11) }
 0x148   : > { %1878 = vmatprep.subr.bf16.mxu0 %v2242_v26  ;;  %1873 = vmatpush3.bf16.msra.mxu1 %v2029_v43 }
 0x14a   : > { %1260 = vperm.xlu0 (!%p1780_p11), %2044, %v2519_v23  }
 0x14e   : > { %1265 = vperm.xlu0 (!%p1780_p11), %2044, %v2523_v24  }
 0x1b4   : > { %v2010_v44 = vpop.permute.xlu0 %2009 }
 0x1b5   : > { %v2012_v45 = vunpack.i.h.bf16 %v2010_v44  ;;  %v2011_v46 = vunpack.i.l.bf16 %v2010_v44 }
 0x1b7   : > { %v894_v52 = vsel %vm864_vm7, %v870_v47, %v2011_v46  ;;  %v895_v53 = vsel %vm864_vm7, %v871_v48, %v2012_v45  ;;  %v1255_v46 = vld [vmem:[#allocation2 + $0x8] sm:$0xff] (!%p1780_p11) }
 0x1b8   : > { %v2015_v49 = vpop.permute.xlu0 %2014 }
 0x1b9   : > { %v2017_v50 = vunpack.i.h.bf16 %v2015_v49  ;;  %v2016_v51 = vunpack.i.l.bf16 %v2015_v49 }
 0x1bb   : > { %v897_v54 = vsel %vm896_vm9, %v894_v52, %v2016_v51  ;;  %v898_v55 = vsel %vm896_vm9, %v895_v53, %v2017_v50 }
 0x1bc   : > { %v899_v56 = vpack.c.bf16 %v898_v55, %v897_v54 }
 0x1be   : > { %1859 = vmatmul.mubr.msk.bf16.vlgmr.msra.gmra.mrb[0].mxu0 %vm955_vm10, %v899_v56  ;;  %1875 = vmatmul.mubr.msk.bf16.vlgmr.msra.gmra.mrb[0].mxu1 %vm955_vm10, %v899_v56 }
 0x1bf   : > { %1882 = vmatprep.mubr.msk.bf16.mxu0 %vm2243_vm8, %v2242_v26  ;;  %1879 = vmatpush3.bf16.msra.mxu0 %v2030_v57 }
 0x1c0   : > { %1880 = vmatprep.subr.bf16.mxu0 %v2242_v26  ;;  %v1180_v26 = vld [vmem:[#allocation3] sm:$0xff] }
 0x1c3   : > { %1881 = vmatpush3.bf16.msra.mxu0 %v2031_v58 }
 0x1c4   : > { %1886 = vmatprep.subr.bf16.mxu0 (!%p1780_p11), %v2246_v36 }
 0x1c9   : > { %v1261_v40 = vpop.permute.xlu0 (!%p1780_p11), %1260 }
 0x1cd   : > { %v1266_v52 = vpop.permute.xlu0 (!%p1780_p11), %1265 }
 0x291   : > { %v993_v60 = vpop.f32.mrb[0].mxu0  ;;  %v1089_v61 = vpop.f32.mrb[0].mxu1 }
 0x292   : > { %v1090_v62 = vadd.f32 %v1766_v59, %v1089_v61  ;;  %v1860_v63 = vpop.f32.mrb[1].mxu0  ;;  %v1876_v0 = vpop.f32.mrb[1].mxu1  ;;  %v994_v9 = vadd.f32 %v1758_v8, %v993_v60 }
 0x293   : > { %v996_v1 = vpop.f32.mrb[2].mxu0  ;;  %v1092_v2 = vpop.f32.mrb[2].mxu1 }
 0x294   : > { %v1774_v3 = vmul.f32 -1.442695, %v1090_v62  ;;  %v1093_v4 = vadd.f32 %v1766_v59, %v1092_v2  ;;  %v1861_v5 = vpop.f32.mrb[3].mxu0  ;;  %v1877_v6 = vpop.f32.mrb[3].mxu1  ;;  %v997_v11 = vadd.f32 %v1758_v8, %v996_v1 }
 0x296   : > { %2032 = vpow2.f32 %v1774_v3  ;;  %v1775_v7 = vmul.f32 -1.442695, %v1093_v4 }
 0x298   : > { %2034 = vpow2.f32 %v1775_v7 }
 0x299   : > { %2036 = vtanh.f32 %v994_v9 }
 0x2a0   : > { %v2033_v10 = vpop.eup %2032 }
 0x2a1   : > { %v1104_v12 = vadd.f32 1.0, %v2033_v10 }
 0x2a2   : > { %v2035_v13 = vpop.eup %2034 }
 0x2a3   : > { %2038 = vrcp.f32 %v1104_v12  ;;  %v1105_v14 = vadd.f32 1.0, %v2035_v13  ;;  %v2037_v15 = vpop.eup %2036 }
 0x2a4   : > { %2040 = vtanh.f32 %v997_v11 }
 0x2a5   : > { %2042 = vrcp.f32 %v1105_v14 }
 0x2ad   : > { %v2039_v16 = vpop.eup %2038 }
 0x2ae   : > { %v2041_v17 = vpop.eup %2040  ;;  %v1110_v18 = vmul.f32 %v2039_v16, %v2037_v15 }
 0x2af   : > { %v2043_v19 = vpop.eup %2042 }
 0x2b0   : > { %v1111_v20 = vmul.f32 %v2043_v19, %v2041_v17 }
 0x2b2   : > { %v1112_v21 = vpack.c.bf16 %v1111_v20, %v1110_v18 }
 0x2b4   : > { %1883 = vmatmul.mubr.msk.bf16.vlgmr.msra.gmra.mrb[4].mxu0 %vm864_vm7, %v1112_v21 }
 0x2b5   : > { %1887 = vmatpush3.bf16.msra.mxu0 (!%p1780_p11), %v2045_v35  ;;  %1890 = vmatprep.mubr.msk.bf16.mxu0 (!%p1780_p11), %vm2247_vm11, %v2246_v36 }
 0x2b6   : > { %1888 = vmatprep.subr.bf16.mxu0 (!%p1780_p11), %v2246_v36 }
 0x2b9   : > { %1889 = vmatpush3.bf16.msra.mxu0 (!%p1780_p11), %v2046_v37 }
 0x2bc   : > { %1891 = vmatmul.mubr.msk.bf16.vlgmr.msra.gmra.mrb[0].mxu0 (!%p1780_p11), %vm864_vm7, %v1112_v21 }
 0x387   : > { %v1173_v25 = vpop.f32.mrb[4].mxu0 }
 0x388   : > { %v1174_v27 = vadd.f32 %v1776_v22, %v1173_v25  ;;  %v1884_v28 = vpop.f32.mrb[5].mxu0  ;;  %1189 = sbr.rel (%p1780_p11) target bundleno = 921 (0x399), region = 92 }
 0x389   : > { %v1176_v29 = vpop.f32.mrb[6].mxu0 }
 0x38a   : > { %v1182_v31 = vadd.f32 %v1180_v26, %v1174_v27  ;;  %v1177_v32 = vadd.f32 %v1776_v22, %v1176_v29  ;;  %v1885_v33 = vpop.f32.mrb[7].mxu0 }
 0x38c   : > { %1184 = vst.msk [vmem:[#allocation3] sm:$0xff] %vm864_vm7, %v1182_v31  ;;  %v1183_v34 = vadd.f32 %v1181_v30, %v1177_v32 }
 0x38e   : > { %1185 = vst.msk [vmem:[#allocation3 + $0x8] sm:$0xff] %vm864_vm7, %v1183_v34 }
 0x38f   : > { %v1247_v41 = vpop.f32.mrb[0].mxu0 }
 0x390   : > { %v1248_v43 = vadd.f32 %v1781_v39, %v1247_v41  ;;  %v1892_v44 = vpop.f32.mrb[1].mxu0 }
 0x391   : > { %v1250_v45 = vpop.f32.mrb[2].mxu0 }
 0x392   : > { %v1256_v47 = vadd.f32 %v1254_v42, %v1248_v43  ;;  %v1251_v48 = vadd.f32 %v1781_v39, %v1250_v45  ;;  %v1893_v49 = vpop.f32.mrb[3].mxu0 }
 0x394   : > { %v1268_v50 = vmul.f32 %v1261_v40, %v1256_v47  ;;  %v1257_v51 = vadd.f32 %v1255_v46, %v1251_v48 }
 0x396   : > { %1270 = vst.msk [vmem:[#allocation2] sm:$0xff] %vm864_vm7, %v1268_v50  ;;  %v1269_v53 = vmul.f32 %v1266_v52, %v1257_v51 }
 0x398   : > { %1271 = vst.msk [vmem:[#allocation2 + $0x8] sm:$0xff] %vm864_vm7, %v1269_v53 }
 0x399 PF: > { %p1785_p12 = scmp.ne.s32.totalorder %s2220_s29, 1 }
 0x39a   : > { %v2249_v54 = vmov (!%p1785_p12), 0   ;;  %s2857_s2 = sld [smem:[#allocation35_spill]] (!%p1785_p12)  ;;  %v2250_v56 = vmov (!%p1785_p12), 0.0   ;;  %s2859_s26 = sld [smem:[#allocation37_spill]] (!%p1785_p12)  ;;  %vm2251_vm12 = vmmov (!%p1785_p12), 0   ;;  %v1430_v21 = vld [vmem:[%s2456_s20] sm:$0xff] (!%p1785_p12) }
 0x39b   : > { %1275 = sbr.rel (%p1785_p12) target bundleno = 1298 (0x512), region = 96  ;;  %2047 = vset.pattern.permute.xlu0 (!%p1785_p12), %v2249_v54  ;;  %1894 = vmatprep.subr.bf16.mxu0 (!%p1785_p12), %v2250_v56  ;;  %s2860_s19 = sld [smem:[#allocation36_spill]] (!%p1785_p12)  ;;  %v1431_v25 = vld [vmem:[%s2456_s20 + $0x8] sm:$0xff] (!%p1785_p12) }
 0x39c   : > { %1280 = vperm.xlu0 (!%p1785_p12), %2047, %v2519_v23   ;;  %1902 = vmatprep.subr.bf16.mxu1 (!%p1785_p12), %v2250_v56  ;;  %s2861_s21 = sld [smem:[#allocation38_spill]] (!%p1785_p12) }
 0x39d   : > { %1898 = vmatprep.mubr.msk.bf16.mxu0 (!%p1785_p12), %vm2251_vm12, %v2250_v56  ;;  %1906 = vmatprep.mubr.msk.bf16.mxu1 (!%p1785_p12), %vm2251_vm12, %v2250_v56  ;;  %v1276_v60 = vld [vmem:[#allocation3] sm:$0xff] (!%p1785_p12) }
 0x39f   : > { %v1277_v61 = vld [vmem:[#allocation3 + $0x8] sm:$0xff] (!%p1785_p12) }
 0x3a0   : > { %s2858_s24 = smov (!%p1785_p12), %s2857_s2  ;;  %v2048_v55 = vld [vmem:[%s2857_s2] sm:$0xff] (!%p1785_p12)   ;;  %v2051_v59 = vld [vmem:[%s2859_s26 + $0x8] sm:$0xff] (!%p1785_p12)   ;;  %1285 = vperm.xlu0 (!%p1785_p12), %2047, %v2523_v24  }
 0x3a1   : > { %v2049_v57 = vld [vmem:[%s2859_s26] sm:$0xff] (!%p1785_p12)   ;;  %1895 = vmatpush3.bf16.msra.mxu0 (!%p1785_p12), %v2048_v55  ;;  %v2050_v58 = vld [vmem:[%s2858_s24 + $0x8] sm:$0xff] (!%p1785_p12)  }
 0x3a2   : > { %1903 = vmatpush3.bf16.msra.mxu1 %v2049_v57  ;;  %1896 = vmatprep.subr.bf16.mxu0 %v2250_v56  ;;  %v1786_v24 = vld [vmem:[%s2860_s19] ss:$0 sm:$0xff] }
 0x3a3   : > { %1904 = vmatprep.subr.bf16.mxu1 %v2250_v56  ;;  %v1790_v2 = vld [vmem:[%s2861_s21] ss:$0 sm:$0xff] }
 0x3a5   : > { %1897 = vmatpush3.bf16.msra.mxu0 %v2050_v58 }
 0x3a6   : > { %1905 = vmatpush3.bf16.msra.mxu1 %v2051_v59 }
 0x41b   : > { %v1281_v23 = vpop.permute.xlu0 %1280 }
 0x41c   : > { %v1288_v63 = vmul.f32 %v1281_v23, %v1276_v60 }
 0x41f   : > { %v1286_v62 = vpop.permute.xlu0 %1285 }
 0x420   : > { %v1289_v0 = vmul.f32 %v1286_v62, %v1277_v61 }
 0x422   : > { %v1290_v1 = vpack.c.bf16 %v1289_v0, %v1288_v63 }
 0x424   : > { %1899 = vmatmul.mubr.msk.bf16.vlgmr.msra.gmra.mrb[0].mxu0 %vm864_vm7, %v1290_v1  ;;  %1907 = vmatmul.mubr.msk.bf16.vlgmr.msra.gmra.mrb[0].mxu1 %vm864_vm7, %v1290_v1 }
 0x4f7   : > { %v1351_v3 = vpop.f32.mrb[0].mxu0  ;;  %v1417_v4 = vpop.f32.mrb[0].mxu1 }
 0x4f8   : > { %v1352_v5 = vadd.f32 %v1786_v24, %v1351_v3  ;;  %v1418_v6 = vadd.f32 %v1790_v2, %v1417_v4  ;;  %v1900_v7 = vpop.f32.mrb[1].mxu0  ;;  %v1908_v8 = vpop.f32.mrb[1].mxu1 }
 0x4f9   : > { %v1354_v9 = vpop.f32.mrb[2].mxu0  ;;  %v1420_v10 = vpop.f32.mrb[2].mxu1 }
 0x4fa   : > { %v1358_v11 = vmul.f32 %v1352_v5, %v1281_v23  ;;  %v1424_v12 = vmul.f32 %v1418_v6, %v1281_v23  ;;  %v1355_v13 = vadd.f32 %v1786_v24, %v1354_v9  ;;  %v1421_v14 = vadd.f32 %v1790_v2, %v1420_v10  ;;  %v1901_v15 = vpop.f32.mrb[3].mxu0  ;;  %v1909_v16 = vpop.f32.mrb[3].mxu1 }
 0x4fc   : > { %1438 = vst.msk [vmem:[%s2496_s23] sm:$0xff] %vm864_vm7, %v1358_v11  ;;  %v1426_v17 = vmul.f32 1.442695, %v1424_v12  ;;  %1440 = vst.msk [vmem:[%s2498_s27] sm:$0xff] %vm864_vm7, %v1424_v12  ;;  %v1359_v18 = vmul.f32 %v1355_v13, %v1286_v62  ;;  %v1425_v19 = vmul.f32 %v1421_v14, %v1286_v62 }
 0x4fe   : > { %2052 = vpow2.f32 %v1426_v17  ;;  %1439 = vst.msk [vmem:[%s2496_s23 + $0x8] sm:$0xff] %vm864_vm7, %v1359_v18  ;;  %v1428_v20 = vmul.f32 1.442695, %v1425_v19  ;;  %1441 = vst.msk [vmem:[%s2498_s27 + $0x8] sm:$0xff] %vm864_vm7, %v1425_v19 }
 0x500   : > { %2054 = vpow2.f32 %v1428_v20 }
 0x508   : > { %v2053_v22 = vpop.eup %2052 }
 0x509   : > { %v1432_v26 = vmul.f32 %v2053_v22, %v1430_v21 }
 0x50a   : > { %v2055_v27 = vpop.eup %2054 }
 0x50b   : > { %v1434_v28 = vadd.f32 %v1432_v26, %v1358_v11  ;;  %v1433_v29 = vmul.f32 %v2055_v27, %v1431_v25 }
 0x50d   : > { %v1436_v30 = vmul.f32 %v1434_v28, %v1281_v23  ;;  %v1435_v31 = vadd.f32 %v1433_v29, %v1359_v18 }
 0x50f   : > { %1442 = vst.msk [vmem:[%s2500_s15] sm:$0xff] %vm864_vm7, %v1436_v30  ;;  %v1437_v32 = vmul.f32 %v1435_v31, %v1286_v62 }
 0x511   : > { %1443 = vst.msk [vmem:[%s2500_s15 + $0x8] sm:$0xff] %vm864_vm7, %v1437_v32 }
 0x512 PF: > { %s2862_s25 = sld [smem:[#allocation22_spill]]  ;;  %s2636_s20 = sshll.u32 %s2224_s30, 8 }
 0x513   : > { %s2865_s29 = sld [smem:[#allocation40_spill]]  ;;  %s1484_s16 = sshll.u32 %s2498_s27, 4  ;;  %s2645_s16 = int_to_ptr.vmem [resolvable:$true] %s1484_s16 }
 0x514   : > { %s2867_s19 = sld [smem:[#allocation39_spill]]  ;;  %s2080_s28 = scalar_lea.vmem %s2645_s16, 256 }
 0x515   : > { %p2081_p0 = scmp.ne.s32.totalorder %s2645_s16, %s2080_s28  ;;  %s2252_s21 = smov [#allocation11]  }
 0x517   : > { %p2082_p1 = pnand %p2081_p0, %p2419_p13 }
 0x518   : > { %s2863_s0 = sadd.s32 4294967295, %s2862_s25   ;;  %s2084_s25 = sshll.u32 %s2252_s21, 4  ;;  %s2085_s25 = int_to_ptr.vmem [resolvable:$false] %s2084_s25 }
 0x519   : > { %s2633_s2 = sand.u32 1, %s2863_s0   ;;  %s2866_s3 = smov %s2865_s29 }
 0x51a   : > { %s2642_s1 = scalar_lea.hbm %s2865_s29, %s2636_s20  ;;  %s2651_s22 = scalar_lea.hbm %s2867_s19, %s2636_s20 }
 0x51b   : > { %s1450_s30 = scalar_lea.sflag [#allocation12], %s2633_s2  ;;  %p2083_p2 = pneg %p2082_p1 }
 0x51c   : > { %s2086_s27 = scalar_lea.vmem %s2085_s25, 512  ;;  %p2087_p3 = scmp.lt.s32.totalorder %s2645_s16, %s2085_s25 }
 0x51d   : > { %p2088_p4 = scmp.lt.s32.totalorder %s2086_s27, %s2080_s28 }
 0x51f   : > { %p2089_p6 = por %p2088_p4, %p2087_p3 }
 0x521   : > { %p2090_p7 = pnand %p2089_p6, %p2083_p2 }
 0x523   : > { %2093 = shalt.err (!%p2090_p7)
}
 0x524   : > { %s2094_s0 = scalar_lea.hbm %s2642_s1, 256  ;;  %s2098_s29 = scalar_lea.hbm %s2866_s3, 512 }
 0x525   : > { %p2095_p8 = scmp.ne.s32.totalorder %s2642_s1, %s2094_s0  ;;  %p2099_p11 = scmp.lt.u32.totalorder %s2642_s1, %s2866_s3 }
 0x526   : > { %p2100_p12 = scmp.lt.u32.totalorder %s2098_s29, %s2094_s0  ;;  %p2102_p1 = scmp.lt.u32.totalorder %s2094_s0, %s2642_s1 }
 0x527   : > { %p2096_p9 = pnand %p2095_p8, %p2419_p13 }
 0x528   : > { %p2101_p0 = por %p2100_p12, %p2099_p11 }
 0x529   : > { %p2097_p10 = pneg %p2096_p9 }
 0x52a   : > { %p2103_p2 = por %p2102_p1, %p2101_p0 }
 0x52c   : > { %p2104_p3 = pnand %p2103_p2, %p2097_p10 }
 0x52e   : > { %2107 = shalt.err (!%p2104_p3)
}
 0x52f   : > { %s2253_s28 = smov 128   ;;  %s2868_s21 = sld [smem:[#allocation18_spill]] }
 0x530   : > { %s2254_s25 = smov 8   ;;  %s1468_s27 = sshll.u32 %s2496_s23, 4  ;;  %s2687_s27 = int_to_ptr.vmem [resolvable:$true] %s1468_s27 }
 0x531   : > { %1912 = dma.vmem_to_hbm [thread:$0]  (%p2419_p13), %s2645_s16, 256, %s2642_s1, %s1450_s30, %s2253_s28, %s2253_s28, %s2254_s25  }
 0x532   : > { %s2869_s5 = sld [smem:[#allocation41_spill]]  ;;  %s1500_s17 = sshll.u32 %s2500_s15, 4  ;;  %s2721_s17 = int_to_ptr.vmem [resolvable:$true] %s1500_s17 }
 0x533   : > { %s2108_s7 = scalar_lea.vmem %s2687_s27, 256  ;;  %s2255_s23 = smov [#allocation9]  }
 0x534   : > { %p2109_p4 = scmp.ne.s32.totalorder %s2687_s27, %s2108_s7  ;;  %s2112_s1 = sshll.u32 %s2255_s23, 4  ;;  %s2113_s1 = int_to_ptr.vmem [resolvable:$false] %s2112_s1 }
 0x535   : > { %s2871_s3 = sand.u32 1, %s2868_s21   ;;  %s2114_s16 = scalar_lea.vmem %s2113_s1, 512 }
 0x536   : > { %s2692_s6 = scalar_lea.sflag [#allocation10], %s2871_s3  ;;  %p2110_p6 = pnand %p2109_p4, %p2419_p13 }
 0x537   : > { %p2115_p8 = scmp.lt.s32.totalorder %s2687_s27, %s2113_s1  ;;  %p2116_p9 = scmp.lt.s32.totalorder %s2114_s16, %s2108_s7 }
 0x538   : > { %s2870_s14 = smov %s2869_s5  ;;  %s2685_s29 = scalar_lea.hbm %s2869_s5, %s2636_s20 }
 0x539   : > { %p2111_p7 = pneg %p2110_p6  ;;  %p2117_p10 = por %p2116_p9, %p2115_p8 }
 0x53b   : > { %p2118_p11 = pnand %p2117_p10, %p2111_p7 }
 0x53d   : > { %2121 = shalt.err (!%p2118_p11)
}
 0x53e   : > { %s2122_s20 = scalar_lea.hbm %s2651_s22, 256  ;;  %s2126_s0 = scalar_lea.hbm %s2867_s19, 512 }
 0x53f   : > { %p2123_p12 = scmp.ne.s32.totalorder %s2651_s22, %s2122_s20  ;;  %p2127_p2 = scmp.lt.u32.totalorder %s2651_s22, %s2867_s19 }
 0x540   : > { %p2128_p3 = scmp.lt.u32.totalorder %s2126_s0, %s2122_s20  ;;  %p2130_p6 = scmp.lt.u32.totalorder %s2122_s20, %s2651_s22 }
 0x541   : > { %p2124_p0 = pnand %p2123_p12, %p2419_p13 }
 0x542   : > { %p2129_p4 = por %p2128_p3, %p2127_p2 }
 0x543   : > { %p2125_p1 = pneg %p2124_p0 }
 0x544   : > { %p2131_p7 = por %p2130_p6, %p2129_p4 }
 0x546   : > { %p2132_p8 = pnand %p2131_p7, %p2125_p1 }
 0x548   : > { %2135 = shalt.err (!%p2132_p8)
}
 0x549   : > { %1911 = dma.vmem_to_hbm [thread:$0]  (%p2419_p13), %s2687_s27, 256, %s2651_s22, %s2692_s6, %s2253_s28, %s2253_s28, %s2254_s25  }
 0x54a   : > { %s2136_s7 = scalar_lea.vmem %s2721_s17, 256  ;;  %s2256_s23 = smov [#allocation13]  }
 0x54b   : > { %p2137_p9 = scmp.ne.s32.totalorder %s2721_s17, %s2136_s7  ;;  %s2140_s1 = sshll.u32 %s2256_s23, 4  ;;  %s2141_s1 = int_to_ptr.vmem [resolvable:$false] %s2140_s1 }
 0x54c   : > { %s2142_s16 = scalar_lea.vmem %s2141_s1, 512  ;;  %p2143_p12 = scmp.lt.s32.totalorder %s2721_s17, %s2141_s1 }
 0x54d   : > { %p2138_p10 = pnand %p2137_p9, %p2419_p13  ;;  %p2144_p0 = scmp.lt.s32.totalorder %s2142_s16, %s2136_s7 }
 0x54f   : > { %p2139_p11 = pneg %p2138_p10  ;;  %p2145_p1 = por %p2144_p0, %p2143_p12 }
 0x551   : > { %p2146_p2 = pnand %p2145_p1, %p2139_p11 }
 0x553   : > { %2149 = shalt.err (!%p2146_p2)
}
 0x554   : > { %s2150_s6 = scalar_lea.hbm %s2685_s29, 256  ;;  %s2154_s27 = scalar_lea.hbm %s2870_s14, 512 }
 0x555   : > { %p2151_p3 = scmp.ne.s32.totalorder %s2685_s29, %s2150_s6  ;;  %p2155_p7 = scmp.lt.u32.totalorder %s2685_s29, %s2870_s14 }
 0x556   : > { %p2156_p8 = scmp.lt.u32.totalorder %s2154_s27, %s2150_s6  ;;  %p2158_p10 = scmp.lt.u32.totalorder %s2150_s6, %s2685_s29 }
 0x557   : > { %p2152_p4 = pnand %p2151_p3, %p2419_p13 }
 0x558   : > { %p2157_p9 = por %p2156_p8, %p2155_p7 }
 0x559   : > { %p2153_p6 = pneg %p2152_p4 }
 0x55a   : > { %p2159_p11 = por %p2158_p10, %p2157_p9 }
 0x55c   : > { %p2160_p12 = pnand %p2159_p11, %p2153_p6 }
 0x55e   : > { %2163 = shalt.err (!%p2160_p12)
}
 0x55f   : > { %1913 = dma.vmem_to_hbm [thread:$0]  (%p2419_p13), %s2721_s17, 256, %s2685_s29, %s1450_s30, %s2253_s28, %s2253_s28, %s2254_s25  }
 0x560 PF: > { %s2872_s21 = sld [smem:[#allocation22_spill]]  ;;  %s2873_s0 = sld [smem:[#allocation17_spill]] }
 0x566   : > { %p1927_p0 = scmp.ge.s32.totalorder %s2872_s21, 2  ;;  %s1515_s5 = sand.u32 1, %s2873_s0  }
 0x567   : > { %s1516_s7 = scalar_lea.sflag [#allocation10], %s1515_s5 }
 0x568   : > { %p1918_p1 = pnand %p1927_p0, %p2431_p5 }
 0x56a   : > { %2199 = dma.done.wait (!%p1918_p1), %s1516_s7, 256  }
 0x56b   : > { %2201 = vsyncadd (!%p1918_p1), %s1516_s7, 4294967040  ;;  %s2875_s18 = sadd.s32 4294967294, %s2872_s21  }
 0x56c   : > { %s1524_s23 = sand.u32 1, %s2875_s18  }
 0x56d   : > { %s1525_s1 = scalar_lea.sflag [#allocation12], %s1524_s23 }
 0x56e   : > { %2203 = dma.done.wait (!%p1918_p1), %s1525_s1, 512  }
 0x56f   : > { %2205 = vsyncadd (!%p1918_p1), %s1525_s1, 4294966784  ;;  %s47_s2 = sadd.s32 1, %s2872_s21   ;;  %s2876_s1 = sld [smem:[#allocation18_spill]] }
 0x570   : > { %p44_p13 = scmp.ge.s32.totalorder %s47_s2, 6   ;;  %s2877_s5 = sld [smem:[#allocation19_spill]] }
 0x571   : > { %s2878_s15 = sld [smem:[#allocation27_spill]]  ;;  %s2879_s29 = sld [smem:[#allocation20_spill]] }
 0x572   : > { %s2880_s30 = sld [smem:[#allocation21_spill]]  ;;  %s2881_s0 = sld [smem:[#allocation23_spill]] }
 0x573   : > { %s2882_s21 = sld [smem:[#allocation25_spill]]  ;;  %46 = sbr.rel (!%p44_p13) target bundleno = 42 (0x2a), region = 192 }
 0x57a   :  { %1539 = vsyncpa [#allocation10], 1 }
 0x57b   :  { %1541 = vsyncpa [#allocation10 + $0x1], 1 }
 0x57c   :  { %1542 = vsyncpa [#allocation12], 1 }
 0x57d   :  { %1544 = vsyncpa [#allocation12 + $0x1], 1 }

</bundles_post_ra>
